<compile_context>
chip_gen: v5e
topology: v5e:2x2
jax: 0.10.0
libtpu: 0.0.40
codegen_flags: <defaults>
</compile_context>

<pallas_src>
import numpy as np

import jax
import jax.numpy as jnp
from jax.experimental import pallas as pl
from jax.experimental.pallas import tpu as pltpu


def _cdiv(a, b):
    return -(-a // b)


def _round_up(x, m):
    return ((x + m - 1) // m) * m


def _build_constants():
    """Host-side 0/1 constants for the lane-dense attention layout.

    Slab column c = i*64 + j*8 + k:
      idx_j[c] = i*8 + j   (source column for 'j-indexed' quantities)
      idx_k[c] = i*8 + k   (source column for 'k-indexed' quantities)
      M1 (64,512): M1[r,c] = (r == idx_j[c]); x@M1 broadcasts along k, x@M1^T sums over k.
      bd_shift(s) (128,128): within-group-of-8 circular lane shift by s, block-diagonal
                             over the two 64-lane halves (for the merged max/min butterfly).
    """
    c = np.arange(512)
    ci, cj, ck = c // 64, (c // 8) % 8, c % 8
    idx_j = (ci * 8 + cj).astype(np.int32)
    idx_k = (ci * 8 + ck).astype(np.int32)
    m1 = (np.arange(64)[:, None] == idx_j[None, :]).astype(np.float32)  # (64, 512)

    a = np.arange(128)[:, None]
    b = np.arange(128)[None, :]

    def bd_shift(s):
        return ((a // 8 == b // 8) & (a % 8 == (b % 8 + s) % 8)).astype(np.float32)

    return idx_j, idx_k, m1, bd_shift(1), bd_shift(2), bd_shift(4)


def prepare_hypernet_att(params):
    """One-time weight fusion + constant construction (hoist out of the hot path).

    params: dict with PyTorch-style (out,in) weights and (64,) biases for
            fc_q / fc_k / fc_v / fc_o.
    """
    idx_j, idx_k, m1_np, p1_np, p2_np, p4_np = _build_constants()
    bf = jnp.bfloat16

    wqT = params["fc_q_w"].T
    wkT = params["fc_k_w"].T
    wvT = params["fc_v_w"].T
    bq, bk, bv = params["fc_q_b"], params["fc_k_b"], params["fc_v_b"]

    # Folded expansion weights (exact column replication -> lossless fold).
    w_exp = jnp.concatenate([wqT[:, idx_j], wkT[:, idx_k], wvT[:, idx_k]], axis=1)
    b_exp = jnp.concatenate([bq[idx_j], bk[idx_k], bv[idx_k]]).reshape(1, 1536)

    # Narrow q | k | -k projection feeding the exact-rowmax / butterfly path.
    w_nar = jnp.concatenate([wqT, wkT, -wkT], axis=1)          # (64, 192)
    b_nar = jnp.concatenate([bq, bk, -bk]).reshape(1, 192)

    return dict(
        w_exp=w_exp.astype(bf), b_exp=b_exp.astype(jnp.float32),
        w_nar=w_nar.astype(bf), b_nar=b_nar.astype(jnp.float32),
        w_o=params["fc_o_w"].T.astype(bf),
        b_o=params["fc_o_b"].reshape(1, 64).astype(jnp.float32),
        m1=jnp.asarray(m1_np, bf), m1t=jnp.asarray(m1_np.T, bf),
        p1=jnp.asarray(p1_np, bf), p2=jnp.asarray(p2_np, bf),
        p4=jnp.asarray(p4_np, bf),
    )


def hypernet_att_kernel(x_ref, wexp_ref, bexp_ref, wnar_ref, bnar_ref,
                        wo_ref, bo_ref, m1_ref, m1t_ref,
                        p1_ref, p2_ref, p4_ref, o_ref):
    x = x_ref[...].astype(jnp.bfloat16)                            # (TB, 64)

    # Narrow projection: q | k | -k  (for the exact row-max trick + butterfly).
    qknk = jnp.dot(x, wnar_ref[...],
                   preferred_element_type=jnp.float32) + bnar_ref[...]   # (TB, 192)
    q = qknk[:, 0:64]
    kk = qknk[:, 64:192]                                           # [k | -k], 128 lanes

    # Single fused expansion matmul -> qe | ke | ve  (TB, 1536), c = i*64+j*8+k.
    qkve = jnp.dot(x, wexp_ref[...],
                   preferred_element_type=jnp.float32) + bexp_ref[...]
    qe = qkve[:, 0:512]
    ke = qkve[:, 512:1024]
    ve = qkve[:, 1024:1536]

    # Merged per-head max/min butterfly at full 128-lane occupancy (3 MXU pushes).
    for p_ref in (p1_ref, p2_ref, p4_ref):
        shifted = jnp.dot(kk.astype(jnp.bfloat16), p_ref[...],
                          preferred_element_type=jnp.float32)
        kk = jnp.maximum(kk, shifted)
    kmaxb = kk[:, 0:64]                                            # per-head max(k)
    kminb = -kk[:, 64:128]                                         # per-head min(k)

    # Exact row max of logits: max_k q*k = q*kmax if q>=0 else q*kmin.
    mrow = q * jnp.where(q >= 0.0, kmaxb, kminb)                   # (TB, 64) f32
    me = jnp.dot(mrow.astype(jnp.bfloat16), m1_ref[...],
                 preferred_element_type=jnp.float32)               # broadcast over k

    p = jnp.exp(qe * ke - me)                                      # f32 VPU/EUP, args ~<= 0

    # Segmented sums over k via M1^T (MXU), then EUP reciprocal.
    m1t = m1t_ref[...]
    denom = jnp.dot(p.astype(jnp.bfloat16), m1t,
                    preferred_element_type=jnp.float32)            # (TB, 64)
    numer = jnp.dot((p * ve).astype(jnp.bfloat16), m1t,
                    preferred_element_type=jnp.float32)
    att = numer * pl.reciprocal(denom, approx=True)                # softmax @ v

    # Output projection.
    o_ref[...] = jnp.dot(att.astype(jnp.bfloat16), wo_ref[...],
                         preferred_element_type=jnp.float32) + bo_ref[...]


def hypernet_att(pair_enc, prepared, block_b=None):
    """pair_enc: (B, 64) f32. prepared: output of prepare_hypernet_att()."""
    B = pair_enc.shape[0]
    if block_b is None:
        # >=2 grid steps (keeps both v7x TensorCores busy); tiles capped at 1024 rows.
        n_steps = max(2, _cdiv(B, 1024))
        block_b = _cdiv(B, n_steps)
    tb = max(8, _round_up(block_b, 8))
    grid = (_cdiv(B, tb),)

    def resident(shape):
        n = len(shape)
        # Whole array, same block every grid step -> stays VMEM-resident.
        return pl.BlockSpec(shape, lambda i, _n=n: (0,) * _n)

    p = prepared
    operands = (pair_enc, p["w_exp"], p["b_exp"], p["w_nar"], p["b_nar"],
                p["w_o"], p["b_o"], p["m1"], p["m1t"], p["p1"], p["p2"], p["p4"])
    in_specs = [pl.BlockSpec((tb, 64), lambda i: (i, 0))] + \
               [resident(op.shape) for op in operands[1:]]
    out_specs = pl.BlockSpec((tb, 64), lambda i: (i, 0))

    return pl.pallas_call(
        hypernet_att_kernel,
        out_shape=jax.ShapeDtypeStruct((B, 64), jnp.float32),
        grid=grid,
        in_specs=in_specs,
        out_specs=out_specs,
        compiler_params=pltpu.CompilerParams(
            dimension_semantics=("parallel",),       # shard batch tiles over v7x's 2 TCs
            vmem_limit_bytes=32 * 1024 * 1024),      # fits v7x's 64 MiB physical VMEM
    )(*operands)


def hypernet_att_ref(pair_enc, params):
    """Pure-JAX f32 reference mirroring the PyTorch code path."""
    def lin(name, x):
        return x @ params[name + "_w"].T + params[name + "_b"]
    q = lin("fc_q", pair_enc)
    k = lin("fc_k", pair_enc)
    v = lin("fc_v", pair_enc)
    B = pair_enc.shape[0]
    qr = q.reshape(B, 1, 8, 8).transpose(0, 2, 3, 1)
    kr = k.reshape(B, 1, 8, 8).transpose(0, 2, 3, 1)
    vr = v.reshape(B, 1, 8, 8).transpose(0, 2, 3, 1)
    attn = jnp.matmul(qr, kr.transpose(0, 1, 3, 2))                # (B,8,8,8)
    attn = jax.nn.softmax(attn, axis=-1)
    o = jnp.matmul(attn, vr)                                       # (B,8,8,1)
    o = o.transpose(0, 3, 1, 2).reshape(B, 64)
    return lin("fc_o", o)


def init_params(key):
    """Deterministic PyTorch-default-style init: U(-1/sqrt(in), 1/sqrt(in))."""
    bound = 1.0 / jnp.sqrt(64.0)
    params = {}
    for name in ("fc_q", "fc_k", "fc_v", "fc_o"):
        key, kw, kb = jax.random.split(key, 3)
        params[name + "_w"] = jax.random.uniform(
            kw, (64, 64), jnp.float32, -bound, bound)              # (out, in)
        params[name + "_b"] = jax.random.uniform(
            kb, (64,), jnp.float32, -bound, bound)
    return params


if __name__ == "__main__":
    key = jax.random.PRNGKey(0)
    key, kx = jax.random.split(key)

    # Small demo: B deliberately not a multiple of the batch tile so the
    # default >=2-step grid and the masked partial tail tile are exercised.
    B = 20
    pair_enc = jax.random.normal(kx, (B, 64), jnp.float32)
    params = init_params(key)

    prepared = prepare_hypernet_att(params)     # one-time weight fusion / constants
    out = hypernet_att(pair_enc, prepared)
    out = jax.block_until_ready(out)

    ref = hypernet_att_ref(pair_enc, params)
    assert out.shape == (B, 64)
    assert bool(jnp.all(jnp.isfinite(out)))
    max_err = float(jnp.max(jnp.abs(out - ref)))
    # bf16 MXU operands (f32 accumulation) + approx EUP reciprocal in the softmax
    # denominator => ~1e-2-level diffs vs the f32 reference.
    assert jnp.allclose(out, ref, atol=5e-2, rtol=5e-2), (
        f"mismatch vs reference, max abs err {max_err}")

    print("KERNEL_OK")
</pallas_src>

<mosaic_0001>
module attributes {stable_mosaic.version = 11 : i64} {
  func.func @hypernet_att_kernel(%arg0: i32, %arg1: memref<16x64xf32, #tpu.memory_space<vmem>>, %arg2: memref<64x1536xbf16, #tpu.memory_space<vmem>>, %arg3: memref<1x1536xf32, #tpu.memory_space<vmem>>, %arg4: memref<64x192xbf16, #tpu.memory_space<vmem>>, %arg5: memref<1x192xf32, #tpu.memory_space<vmem>>, %arg6: memref<64x64xbf16, #tpu.memory_space<vmem>>, %arg7: memref<1x64xf32, #tpu.memory_space<vmem>>, %arg8: memref<64x512xbf16, #tpu.memory_space<vmem>>, %arg9: memref<512x64xbf16, #tpu.memory_space<vmem>>, %arg10: memref<128x128xbf16, #tpu.memory_space<vmem>>, %arg11: memref<128x128xbf16, #tpu.memory_space<vmem>>, %arg12: memref<128x128xbf16, #tpu.memory_space<vmem>>, %arg13: memref<16x64xf32, #tpu.memory_space<vmem>>) attributes {dimension_semantics = [#tpu.dimension_semantics<parallel>], iteration_bounds = array<i64: 2>, scalar_prefetch = 0 : i64, scratch_operands = 0 : i64, tpu.core_type = #tpu.core_type<tc>, window_params = [{transform_indices = @transform_0, window_bounds = array<i64: 16, 64>}, {pipeline_mode = #tpu.pipeline_mode<synchronous>, transform_indices = @transform_1, window_bounds = array<i64: 64, 1536>}, {pipeline_mode = #tpu.pipeline_mode<synchronous>, transform_indices = @transform_2, window_bounds = array<i64: 1, 1536>}, {pipeline_mode = #tpu.pipeline_mode<synchronous>, transform_indices = @transform_3, window_bounds = array<i64: 64, 192>}, {pipeline_mode = #tpu.pipeline_mode<synchronous>, transform_indices = @transform_4, window_bounds = array<i64: 1, 192>}, {pipeline_mode = #tpu.pipeline_mode<synchronous>, transform_indices = @transform_5, window_bounds = array<i64: 64, 64>}, {pipeline_mode = #tpu.pipeline_mode<synchronous>, transform_indices = @transform_6, window_bounds = array<i64: 1, 64>}, {pipeline_mode = #tpu.pipeline_mode<synchronous>, transform_indices = @transform_7, window_bounds = array<i64: 64, 512>}, {pipeline_mode = #tpu.pipeline_mode<synchronous>, transform_indices = @transform_8, window_bounds = array<i64: 512, 64>}, {pipeline_mode = #tpu.pipeline_mode<synchronous>, transform_indices = @transform_9, window_bounds = array<i64: 128, 128>}, {pipeline_mode = #tpu.pipeline_mode<synchronous>, transform_indices = @transform_10, window_bounds = array<i64: 128, 128>}, {pipeline_mode = #tpu.pipeline_mode<synchronous>, transform_indices = @transform_11, window_bounds = array<i64: 128, 128>}, {transform_indices = @transform_12, window_bounds = array<i64: 16, 64>}]} {
    %c0 = arith.constant 0 : index
    %c0_0 = arith.constant 0 : index
    %0 = vector.load %arg1[%c0, %c0_0] : memref<16x64xf32, #tpu.memory_space<vmem>>, vector<16x64xf32>
    %1 = arith.truncf %0 : vector<16x64xf32> to vector<16x64xbf16>
    %c0_1 = arith.constant 0 : index
    %c0_2 = arith.constant 0 : index
    %2 = vector.load %arg4[%c0_1, %c0_2] : memref<64x192xbf16, #tpu.memory_space<vmem>>, vector<64x192xbf16>
    %cst = arith.constant dense<0.000000e+00> : vector<16x192xf32>
    %3 = tpu.matmul %1, %2, %cst {dimension_numbers = #tpu.dot_dimension_numbers<[1], [0], [0], [1], [0, 0, 1, 1], [], []>} : vector<16x64xbf16>, vector<64x192xbf16>, vector<16x192xf32> -> vector<16x192xf32>
    %c0_3 = arith.constant 0 : index
    %c0_4 = arith.constant 0 : index
    %4 = vector.load %arg5[%c0_3, %c0_4] : memref<1x192xf32, #tpu.memory_space<vmem>>, vector<1x192xf32>
    %5 = vector.broadcast %4 : vector<1x192xf32> to vector<16x192xf32>
    %6 = arith.addf %3, %5 : vector<16x192xf32>
    %7 = vector.extract_strided_slice %6 {offsets = [0, 0], sizes = [16, 64], strides = [1, 1]} : vector<16x192xf32> to vector<16x64xf32>
    %8 = vector.extract_strided_slice %6 {offsets = [0, 64], sizes = [16, 128], strides = [1, 1]} : vector<16x192xf32> to vector<16x128xf32>
    %c0_5 = arith.constant 0 : index
    %c0_6 = arith.constant 0 : index
    %9 = vector.load %arg2[%c0_5, %c0_6] : memref<64x1536xbf16, #tpu.memory_space<vmem>>, vector<64x1536xbf16>
    %cst_7 = arith.constant dense<0.000000e+00> : vector<16x1536xf32>
    %10 = tpu.matmul %1, %9, %cst_7 {dimension_numbers = #tpu.dot_dimension_numbers<[1], [0], [0], [1], [0, 0, 1, 1], [], []>} : vector<16x64xbf16>, vector<64x1536xbf16>, vector<16x1536xf32> -> vector<16x1536xf32>
    %c0_8 = arith.constant 0 : index
    %c0_9 = arith.constant 0 : index
    %11 = vector.load %arg3[%c0_8, %c0_9] : memref<1x1536xf32, #tpu.memory_space<vmem>>, vector<1x1536xf32>
    %12 = vector.broadcast %11 : vector<1x1536xf32> to vector<16x1536xf32>
    %13 = arith.addf %10, %12 : vector<16x1536xf32>
    %14 = vector.extract_strided_slice %13 {offsets = [0, 0], sizes = [16, 512], strides = [1, 1]} : vector<16x1536xf32> to vector<16x512xf32>
    %15 = vector.extract_strided_slice %13 {offsets = [0, 512], sizes = [16, 512], strides = [1, 1]} : vector<16x1536xf32> to vector<16x512xf32>
    %16 = vector.extract_strided_slice %13 {offsets = [0, 1024], sizes = [16, 512], strides = [1, 1]} : vector<16x1536xf32> to vector<16x512xf32>
    %17 = arith.truncf %8 : vector<16x128xf32> to vector<16x128xbf16>
    %c0_10 = arith.constant 0 : index
    %c0_11 = arith.constant 0 : index
    %18 = vector.load %arg10[%c0_10, %c0_11] : memref<128x128xbf16, #tpu.memory_space<vmem>>, vector<128x128xbf16>
    %cst_12 = arith.constant dense<0.000000e+00> : vector<16x128xf32>
    %19 = tpu.matmul %17, %18, %cst_12 {dimension_numbers = #tpu.dot_dimension_numbers<[1], [0], [0], [1], [0, 0, 1, 1], [], []>} : vector<16x128xbf16>, vector<128x128xbf16>, vector<16x128xf32> -> vector<16x128xf32>
    %20 = arith.maximumf %8, %19 : vector<16x128xf32>
    %21 = arith.truncf %20 : vector<16x128xf32> to vector<16x128xbf16>
    %c0_13 = arith.constant 0 : index
    %c0_14 = arith.constant 0 : index
    %22 = vector.load %arg11[%c0_13, %c0_14] : memref<128x128xbf16, #tpu.memory_space<vmem>>, vector<128x128xbf16>
    %cst_15 = arith.constant dense<0.000000e+00> : vector<16x128xf32>
    %23 = tpu.matmul %21, %22, %cst_15 {dimension_numbers = #tpu.dot_dimension_numbers<[1], [0], [0], [1], [0, 0, 1, 1], [], []>} : vector<16x128xbf16>, vector<128x128xbf16>, vector<16x128xf32> -> vector<16x128xf32>
    %24 = arith.maximumf %20, %23 : vector<16x128xf32>
    %25 = arith.truncf %24 : vector<16x128xf32> to vector<16x128xbf16>
    %c0_16 = arith.constant 0 : index
    %c0_17 = arith.constant 0 : index
    %26 = vector.load %arg12[%c0_16, %c0_17] : memref<128x128xbf16, #tpu.memory_space<vmem>>, vector<128x128xbf16>
    %cst_18 = arith.constant dense<0.000000e+00> : vector<16x128xf32>
    %27 = tpu.matmul %25, %26, %cst_18 {dimension_numbers = #tpu.dot_dimension_numbers<[1], [0], [0], [1], [0, 0, 1, 1], [], []>} : vector<16x128xbf16>, vector<128x128xbf16>, vector<16x128xf32> -> vector<16x128xf32>
    %28 = arith.maximumf %24, %27 : vector<16x128xf32>
    %29 = vector.extract_strided_slice %28 {offsets = [0, 0], sizes = [16, 64], strides = [1, 1]} : vector<16x128xf32> to vector<16x64xf32>
    %30 = vector.extract_strided_slice %28 {offsets = [0, 64], sizes = [16, 64], strides = [1, 1]} : vector<16x128xf32> to vector<16x64xf32>
    %cst_19 = arith.constant 0.000000e+00 : f32
    %31 = vector.broadcast %cst_19 : f32 to vector<16x64xf32>
    %32 = arith.subf %31, %30 : vector<16x64xf32>
    %cst_20 = arith.constant 0.000000e+00 : f32
    %33 = vector.broadcast %cst_20 : f32 to vector<16x64xf32>
    %34 = arith.cmpf oge, %7, %33 : vector<16x64xf32>
    %35 = arith.select %34, %29, %32 : vector<16x64xi1>, vector<16x64xf32>
    %36 = arith.mulf %7, %35 : vector<16x64xf32>
    %37 = arith.truncf %36 : vector<16x64xf32> to vector<16x64xbf16>
    %c0_21 = arith.constant 0 : index
    %c0_22 = arith.constant 0 : index
    %38 = vector.load %arg8[%c0_21, %c0_22] : memref<64x512xbf16, #tpu.memory_space<vmem>>, vector<64x512xbf16>
    %cst_23 = arith.constant dense<0.000000e+00> : vector<16x512xf32>
    %39 = tpu.matmul %37, %38, %cst_23 {dimension_numbers = #tpu.dot_dimension_numbers<[1], [0], [0], [1], [0, 0, 1, 1], [], []>} : vector<16x64xbf16>, vector<64x512xbf16>, vector<16x512xf32> -> vector<16x512xf32>
    %40 = arith.mulf %14, %15 : vector<16x512xf32>
    %41 = arith.subf %40, %39 : vector<16x512xf32>
    %42 = math.exp %41 : vector<16x512xf32>
    %c0_24 = arith.constant 0 : index
    %c0_25 = arith.constant 0 : index
    %43 = vector.load %arg9[%c0_24, %c0_25] : memref<512x64xbf16, #tpu.memory_space<vmem>>, vector<512x64xbf16>
    %44 = arith.truncf %42 : vector<16x512xf32> to vector<16x512xbf16>
    %cst_26 = arith.constant dense<0.000000e+00> : vector<16x64xf32>
    %45 = tpu.matmul %44, %43, %cst_26 {dimension_numbers = #tpu.dot_dimension_numbers<[1], [0], [0], [1], [0, 0, 1, 1], [], []>} : vector<16x512xbf16>, vector<512x64xbf16>, vector<16x64xf32> -> vector<16x64xf32>
    %46 = arith.mulf %42, %16 : vector<16x512xf32>
    %47 = arith.truncf %46 : vector<16x512xf32> to vector<16x512xbf16>
    %cst_27 = arith.constant dense<0.000000e+00> : vector<16x64xf32>
    %48 = tpu.matmul %47, %43, %cst_27 {dimension_numbers = #tpu.dot_dimension_numbers<[1], [0], [0], [1], [0, 0, 1, 1], [], []>} : vector<16x512xbf16>, vector<512x64xbf16>, vector<16x64xf32> -> vector<16x64xf32>
    %49 = tpu.reciprocal %45 {approx = true} : vector<16x64xf32> -> vector<16x64xf32>
    %50 = arith.mulf %48, %49 : vector<16x64xf32>
    %51 = arith.truncf %50 : vector<16x64xf32> to vector<16x64xbf16>
    %c0_28 = arith.constant 0 : index
    %c0_29 = arith.constant 0 : index
    %52 = vector.load %arg6[%c0_28, %c0_29] : memref<64x64xbf16, #tpu.memory_space<vmem>>, vector<64x64xbf16>
    %cst_30 = arith.constant dense<0.000000e+00> : vector<16x64xf32>
    %53 = tpu.matmul %51, %52, %cst_30 {dimension_numbers = #tpu.dot_dimension_numbers<[1], [0], [0], [1], [0, 0, 1, 1], [], []>} : vector<16x64xbf16>, vector<64x64xbf16>, vector<16x64xf32> -> vector<16x64xf32>
    %c0_31 = arith.constant 0 : index
    %c0_32 = arith.constant 0 : index
    %54 = vector.load %arg7[%c0_31, %c0_32] : memref<1x64xf32, #tpu.memory_space<vmem>>, vector<1x64xf32>
    %55 = vector.broadcast %54 : vector<1x64xf32> to vector<16x64xf32>
    %56 = arith.addf %53, %55 : vector<16x64xf32>
    %c0_33 = arith.constant 0 : index
    %c0_34 = arith.constant 0 : index
    %57 = vector.load %arg13[%c0_33, %c0_34] : memref<16x64xf32, #tpu.memory_space<vmem>>, vector<16x64xf32>
    tpu.vector_store %arg13[%c0_33, %c0_34], %56 {strides = array<i32>} : memref<16x64xf32, #tpu.memory_space<vmem>>, vector<16x64xf32>,
    return
  }
  func.func @transform_0(%arg0: i32) -> (i32, i32) {
    %c0_i32 = arith.constant 0 : i32
    %c0_i32_0 = arith.constant 0 : i32
    return %arg0, %c0_i32 : i32, i32
  }
  func.func @transform_1(%arg0: i32) -> (i32, i32) {
    %c0_i32 = arith.constant 0 : i32
    %c0_i32_0 = arith.constant 0 : i32
    %c0_i32_1 = arith.constant 0 : i32
    return %c0_i32, %c0_i32_0 : i32, i32
  }
  func.func @transform_2(%arg0: i32) -> (i32, i32) {
    %c0_i32 = arith.constant 0 : i32
    %c0_i32_0 = arith.constant 0 : i32
    %c0_i32_1 = arith.constant 0 : i32
    return %c0_i32, %c0_i32_0 : i32, i32
  }
  func.func @transform_3(%arg0: i32) -> (i32, i32) {
    %c0_i32 = arith.constant 0 : i32
    %c0_i32_0 = arith.constant 0 : i32
    %c0_i32_1 = arith.constant 0 : i32
    return %c0_i32, %c0_i32_0 : i32, i32
  }
  func.func @transform_4(%arg0: i32) -> (i32, i32) {
    %c0_i32 = arith.constant 0 : i32
    %c0_i32_0 = arith.constant 0 : i32
    %c0_i32_1 = arith.constant 0 : i32
    return %c0_i32, %c0_i32_0 : i32, i32
  }
  func.func @transform_5(%arg0: i32) -> (i32, i32) {
    %c0_i32 = arith.constant 0 : i32
    %c0_i32_0 = arith.constant 0 : i32
    %c0_i32_1 = arith.constant 0 : i32
    return %c0_i32, %c0_i32_0 : i32, i32
  }
  func.func @transform_6(%arg0: i32) -> (i32, i32) {
    %c0_i32 = arith.constant 0 : i32
    %c0_i32_0 = arith.constant 0 : i32
    %c0_i32_1 = arith.constant 0 : i32
    return %c0_i32, %c0_i32_0 : i32, i32
  }
  func.func @transform_7(%arg0: i32) -> (i32, i32) {
    %c0_i32 = arith.constant 0 : i32
    %c0_i32_0 = arith.constant 0 : i32
    %c0_i32_1 = arith.constant 0 : i32
    return %c0_i32, %c0_i32_0 : i32, i32
  }
  func.func @transform_8(%arg0: i32) -> (i32, i32) {
    %c0_i32 = arith.constant 0 : i32
    %c0_i32_0 = arith.constant 0 : i32
    %c0_i32_1 = arith.constant 0 : i32
    return %c0_i32, %c0_i32_0 : i32, i32
  }
  func.func @transform_9(%arg0: i32) -> (i32, i32) {
    %c0_i32 = arith.constant 0 : i32
    %c0_i32_0 = arith.constant 0 : i32
    %c0_i32_1 = arith.constant 0 : i32
    return %c0_i32, %c0_i32_0 : i32, i32
  }
  func.func @transform_10(%arg0: i32) -> (i32, i32) {
    %c0_i32 = arith.constant 0 : i32
    %c0_i32_0 = arith.constant 0 : i32
    %c0_i32_1 = arith.constant 0 : i32
    return %c0_i32, %c0_i32_0 : i32, i32
  }
  func.func @transform_11(%arg0: i32) -> (i32, i32) {
    %c0_i32 = arith.constant 0 : i32
    %c0_i32_0 = arith.constant 0 : i32
    %c0_i32_1 = arith.constant 0 : i32
    return %c0_i32, %c0_i32_0 : i32, i32
  }
  func.func @transform_12(%arg0: i32) -> (i32, i32) {
    %c0_i32 = arith.constant 0 : i32
    %c0_i32_0 = arith.constant 0 : i32
    return %arg0, %c0_i32 : i32, i32
  }
}

</mosaic_0001>

<bundles_post_ra>
// kernel: tpu_custom_call.1
= control target key start
LH: loop header
LB: loop body
LE: loop exit
PB: predicated region body
PF: predicated region fallthrough
CT: control target
= control target key end

     0   :  { %s4483_s0 = inlined_call_operand.hbm [shape: f32[20,64], index: 0, kind: input, shape index: {}]   ;;  %s4484_s1 = inlined_call_operand.vmem [shape: bf16[64,1536], index: 1, kind: input, shape index: {}]   ;;  %s4485_s2 = inlined_call_operand.hbm [shape: f32[1,1536], index: 2, kind: input, shape index: {}]   ;;  %s4486_s3 = inlined_call_operand.hbm [shape: bf16[64,192], index: 3, kind: input, shape index: {}]   ;;  %s4487_s4 = inlined_call_operand.hbm [shape: f32[1,192], index: 4, kind: input, shape index: {}]   ;;  %s4488_s5 = inlined_call_operand.hbm [shape: bf16[64,64], index: 5, kind: input, shape index: {}]   ;;  %s4489_s6 = inlined_call_operand.vmem [shape: f32[1,64], index: 6, kind: input, shape index: {}]   ;;  %s4490_s7 = inlined_call_operand.hbm [shape: bf16[64,512], index: 7, kind: input, shape index: {}]   ;;  %s4491_s8 = inlined_call_operand.vmem [shape: bf16[512,64], index: 8, kind: input, shape index: {}]   ;;  %s4492_s9 = inlined_call_operand.hbm [shape: bf16[128,128], index: 9, kind: input, shape index: {}]   ;;  %s4493_s10 = inlined_call_operand.hbm [shape: bf16[128,128], index: 10, kind: input, shape index: {}]   ;;  %s4494_s11 = inlined_call_operand.hbm [shape: bf16[128,128], index: 11, kind: input, shape index: {}]   ;;  %s4495_s12 = inlined_call_operand.hbm [shape: f32[20,64], index: 12, kind: output, shape index: {}]  }
   0x1   :  { %4504 = sst [smem:[#allocation29_spill]] %s4485_s2 }
   0x2   :  { %4505 = sst [smem:[#allocation30_spill]] %s4486_s3 }
   0x3   :  { %4506 = sst [smem:[#allocation31_spill]] %s4487_s4 }
   0x4   :  { %4507 = sst [smem:[#allocation32_spill]] %s4490_s7 }
   0x5   :  { %4508 = sst [smem:[#allocation33_spill]] %s4495_s12 }
   0x6   :  { %17 = vsyncpa [#allocation3], 0 }
   0x7   :  { %19 = vsyncpa [#allocation3 + $0x1], 0 }
   0x8   :  { %20 = vsyncpa [#allocation6], 0 }
   0x9   :  { %21 = vsyncpa [#allocation9], 0 }
   0xa   :  { %22 = vsyncpa [#allocation12], 0 }
   0xb   :  { %23 = vsyncpa [#allocation15], 0 }
   0xc   :  { %24 = vsyncpa [#allocation4], 0 }
   0xd   :  { %26 = vsyncpa [#allocation4 + $0x1], 0  ;;  %s3605_s21 = smov 0   ;;  %s3607_s22 = smov 0  }
   0xe   :  { %s3609_s23 = smov 0   ;;  %s3611_s24 = smov 0  }
   0xf LB: > { %4509 = sst [smem:[#allocation24_spill]] %s3505_s21  ;;  %s3626_s25 = sadd.s32 4294967295, %s3517_s24   ;;  %s3517_s24 = sphi %s3611_s24, %s4540_s24   ;;  %s3513_s23 = sphi %s3609_s23, %s4544_s23   ;;  %s3509_s22 = sphi %s3607_s22, %s4543_s22   ;;  %s3505_s21 = sphi %s3605_s21, %s4542_s21  }
  0x10   : > { %s2274_s26 = sadd.s32 4294967294, %s3517_s24   ;;  %s3630_s27 = sadd.s32 1, %s3517_s24  }
  0x11   : > { %4510 = sst [smem:[#allocation25_spill]] %s3630_s27  ;;  %s39_s28 = sadd.s32 1, %s3513_s23 }
  0x12   : > { %s36_s29 = ssub.s32 %s3517_s24, %s3630_s27  ;;  %p46_p0 = scmp.ne.s32.totalorder %s3513_s23, %s3509_s22 }
  0x13   : > { %p37_p1 = scmp.eq.s32.totalorder %s36_s29, 0  ;;  %p47_p2 = scmp.eq.s32.totalorder %s3517_s24, 0 }
  0x14   : > { %p52_p3 = scmp.ne.s32.totalorder %s3509_s22, %s3505_s21  ;;  %p4503_p4 = scmp.eq.s32.totalorder %s3626_s25, 0 }
  0x15   : > { %s3642_s30 = scalar_select %p37_p1, %s3513_s23, %s39_s28  }
  0x16   : > { %p3644_p5 = por %p47_p2, %p46_p0  ;;  %p3650_p6 = por %p4503_p4, %p52_p3 }
  0x17   : > { %4511 = sst [smem:[#allocation26_spill]] %s3642_s30  ;;  %p307_p7 = scmp.eq.s32.totalorder %s3626_s25, 1 }
  0x18   : > { %p313_p8 = scmp.eq.s32.totalorder %s2274_s26, 1  ;;  %p2275_p9 = scmp.ge.s32.totalorder %s3517_s24, 1 }
  0x19   : > { %p320_p10 = scmp.lt.s32.totalorder %s3517_s24, 3  ;;  %p3657_p11 = por %p307_p7, %p46_p0 }
  0x1a   : > { %p3661_p12 = por %p313_p8, %p52_p3  ;;  %s4519_s2 = sld [smem:[#allocation29_spill]] }
  0x1b   : > { %s4514_s15 = scalar_select %p3657_p11, 1, 0 }
  0x1c   : > { %s4516_s16 = scalar_select %p3661_p12, 1, 0 }
  0x1d   : > { %4515 = sst [smem:[#allocation27_spill]] %s4514_s15  ;;  %p3665_p13 = pnand %p2275_p9, %p320_p10 }
  0x1e   : > { %4517 = sst [smem:[#allocation28_spill]] %s4516_s16  ;;  %s3519_s26 = smov [#allocation5]  }
  0x1f   : > { %p3027_p1 = pneg %p3665_p13  ;;  %s337_s28 = sshll.u32 %s3519_s26, 4  ;;  %s338_s28 = int_to_ptr.vmem [resolvable:$true] %s337_s28 }
  0x20   : > { %s335_s20 = sshll.u32 %s4519_s2, 4  ;;  %s4520_s4 = sld [smem:[#allocation31_spill]]  ;;  %s336_s20 = int_to_ptr.hbm [resolvable:$true] %s335_s20 }
  0x21   : > { %p3679_p0 = pnand %p3027_p1, %p4503_p4  ;;  %s3520_s18 = smov [#allocation8]  }
  0x22   : > { %s363_s19 = sshll.u32 %s3520_s18, 4  ;;  %s4522_s7 = sld [smem:[#allocation32_spill]]  ;;  %s364_s19 = int_to_ptr.vmem [resolvable:$true] %s363_s19 }
  0x23   : > { %3030 = dma.hbm_to_vmem [thread:$0]  (!%p3679_p0), %s336_s20, 192, %s338_s28, [#allocation6]  }
  0x24   : > { %s3521_s29 = smov [#allocation11]   ;;  %s3522_s21 = smov 256  }
  0x25   : > { %s3523_s12 = smov 16   ;;  %s420_s20 = sshll.u32 %s4493_s10, 4  ;;  %s421_s20 = int_to_ptr.hbm [resolvable:$true] %s420_s20 }
  0x26   : > { %s361_s27 = sshll.u32 %s4520_s4, 4  ;;  %s391_s4 = sshll.u32 %s3521_s29, 4  ;;  %s362_s27 = int_to_ptr.hbm [resolvable:$true] %s361_s27  ;;  %s392_s4 = int_to_ptr.vmem [resolvable:$true] %s391_s4 }
  0x27   : > { %3036 = dma.hbm_to_vmem [thread:$0]  (!%p3679_p0), %s362_s27, 32, %s364_s19, [#allocation9]  }
  0x28   : > { %s389_s30 = sshll.u32 %s4522_s7, 4  ;;  %s3524_s28 = smov [#allocation14]   ;;  %s390_s30 = int_to_ptr.hbm [resolvable:$true] %s389_s30 }
  0x29   : > { %3042 = dma.hbm_to_vmem [thread:$0]  (!%p3679_p0), %s390_s30, 2048, %s392_s4, [#allocation12], %s3522_s21, %s3522_s21, %s3523_s12  }
  0x2a   : > { %s422_s2 = sshll.u32 %s3524_s28, 4  ;;  %s4523_s3 = sld [smem:[#allocation30_spill]]  ;;  %s423_s2 = int_to_ptr.vmem [resolvable:$true] %s422_s2 }
  0x2b   : > { %s3525_s7 = smov 64   ;;  %s3526_s29 = smov 4  }
  0x2c   : > { %3048 = dma.hbm_to_vmem [thread:$0]  (!%p3679_p0), %s421_s20, 1024, %s423_s2, [#allocation15], %s3525_s7, %s3525_s7, %s3526_s29  }
  0x2d   : > { %s3527_s4 = smov [#allocation7]   ;;  %s3528_s21 = smov 128  }
  0x2e   : > { %s348_s12 = sshll.u32 %s3527_s4, 4  ;;  %s3529_s15 = smov 8   ;;  %s349_s12 = int_to_ptr.vmem [resolvable:$true] %s348_s12 }
  0x2f   : > { %s372_s28 = sshll.u32 %s4488_s5, 4  ;;  %s3530_s26 = smov [#allocation10]   ;;  %s373_s28 = int_to_ptr.hbm [resolvable:$true] %s372_s28 }
  0x30   : > { %s346_s19 = sshll.u32 %s4523_s3, 4  ;;  %s374_s27 = sshll.u32 %s3530_s26, 4  ;;  %s347_s19 = int_to_ptr.hbm [resolvable:$true] %s346_s19  ;;  %s375_s27 = int_to_ptr.vmem [resolvable:$true] %s374_s27 }
  0x31   : > { %3033 = dma.hbm_to_vmem [thread:$0]  (!%p3679_p0), %s347_s19, 1024, %s349_s12, [#allocation6], %s3528_s21, %s3528_s21, %s3529_s15  }
  0x32   : > { %s406_s2 = sshll.u32 %s4492_s9, 4  ;;  %s3531_s19 = smov [#allocation13]   ;;  %s407_s2 = int_to_ptr.hbm [resolvable:$true] %s406_s2 }
  0x33   : > { %3039 = dma.hbm_to_vmem [thread:$0]  (!%p3679_p0), %s373_s28, 512, %s375_s27, [#allocation9], %s3525_s7, %s3525_s7, %s3526_s29  }
  0x34   : > { %s408_s4 = sshll.u32 %s3531_s19, 4  ;;  %s434_s15 = sshll.u32 %s4494_s11, 4  ;;  %s409_s4 = int_to_ptr.vmem [resolvable:$true] %s408_s4  ;;  %s435_s15 = int_to_ptr.hbm [resolvable:$true] %s434_s15 }
  0x35   : > { %3045 = dma.hbm_to_vmem [thread:$0]  (!%p3679_p0), %s407_s2, 1024, %s409_s4, [#allocation12], %s3525_s7, %s3525_s7, %s3526_s29  }
  0x36   : > { %s3532_s3 = smov [#allocation16]   ;;  %p4502_p2 = scmp.ge.s32.totalorder %s3517_s24, 2 }
  0x37   : > { %s436_s30 = sshll.u32 %s3532_s3, 4  ;;  %s437_s30 = int_to_ptr.vmem [resolvable:$true] %s436_s30 }
  0x38   : > { %3051 = dma.hbm_to_vmem [thread:$0]  (!%p3679_p0), %s435_s15, 1024, %s437_s30, [#allocation15], %s3525_s7, %s3525_s7, %s3526_s29  }
  0x39   : > { %446 = sbr.rel (%p4502_p2) target bundleno = 98 (0x62), region = 60 }
  0x3e   : > { %449 = sbr.rel (!%p3644_p5) target bundleno = 98 (0x62), region = 64  ;;  %s450_s18 = sand.u32 (%p3644_p5), 1, %s3513_s23  }
  0x3f   : > { %s2286_s28 = sshll.u32 (%p3644_p5), %s3517_s24, 1  ;;  %s2285_s26 = sshll.u32 (%p3644_p5), %s450_s18, 4 }
  0x40   : > { %s456_s27 = ssub.s32 (%p3644_p5), 3, %s2286_s28  ;;  %s3739_s20 = scalar_lea.sflag (%p3644_p5), [#allocation3], %s450_s18 }
  0x41   : > { %p457_p3 = scmp.lt.s32.totalorder (%p3644_p5), %s456_s27, 2  ;;  %s454_s2 = scalar_lea.vmem (%p3644_p5), [#allocation2], %s2285_s26 }
  0x43   : > { %s4546_s27 = smov (!%p457_p3, %s456_s27), 2 }
  0x44   : > { %s2287_s16 = sshll.u32 %s4546_s27, 3 }
  0x45   : > { %s460_s7 = ssub.s32 16, %s2287_s16 }
  0x46   : > { %s461_s29 = sshll.u32 %s460_s7, 4 }
  0x47   : > { %462 = vsyncadd %s3739_s20, %s461_s29  ;;  %p3742_p5 = scmp.ne.s32.totalorder %s2287_s16, 0  ;;  %s2859_s19 = sshll.u32 %s3517_s24, 4 }
  0x48   : > { %s465_s21 = scalar_lea.hbm %s4483_s0, %s2859_s19  ;;  %s3750_s15 = sshll.u32 %s454_s2, 4  ;;  %s470_s15 = int_to_ptr.vmem [resolvable:$true] %s3750_s15 }
  0x49   : > { %s467_s3 = sshll.u32 %s465_s21, 4  ;;  %s2291_s30 = sshll.u32 %s4546_s27, 7  ;;  %s3753_s3 = int_to_ptr.hbm [resolvable:$true] %s467_s3 }
  0x4a   : > { %s3385_s18 = sshra.s32 %s3753_s3, 4  ;;  %s3387_s28 = sshrl.u32 %s2291_s30, 4  ;;  %s3386_s18 = int_to_ptr.hbm [resolvable:$true] %s3385_s18 }
  0x4b   : > { %s3392_s26 = scalar_lea.hbm %s3386_s18, %s3387_s28  ;;  %s3396_s29 = scalar_lea.hbm %s4483_s0, 24 }
  0x4c   : > { %p3393_p7 = scmp.ne.s32.totalorder %s3386_s18, %s3392_s26  ;;  %p3397_p10 = scmp.lt.s32.totalorder %s3386_s18, %s4483_s0 }
  0x4d   : > { %p3398_p1 = scmp.lt.s32.totalorder %s3396_s29, %s3392_s26 }
  0x4e   : > { %p3394_p8 = pnand %p3393_p7, %p3742_p5 }
  0x4f   : > { %p3399_p0 = por %p3398_p1, %p3397_p10 }
  0x50   : > { %p3395_p9 = pneg %p3394_p8 }
  0x52   : > { %p3400_p3 = pnand %p3399_p0, %p3395_p9 }
  0x54   : > { %3403 = shalt.err (!%p3400_p3)
}
  0x55   : > { %s3404_s4 = sshra.s32 %s470_s15, 4  ;;  %s3533_s21 = smov [#allocation2]   ;;  %s3405_s4 = int_to_ptr.vmem [resolvable:$true] %s3404_s4 }
  0x56   : > { %s3411_s12 = scalar_lea.vmem %s3405_s4, %s3387_s28  ;;  %s3415_s16 = scalar_lea.vmem %s3533_s21, 32 }
  0x57   : > { %p3412_p7 = scmp.ne.s32.totalorder %s3405_s4, %s3411_s12  ;;  %p3417_p4 = scmp.lt.s32.totalorder %s3415_s16, %s3411_s12 }
  0x59   : > { %p3413_p8 = pnand %p3412_p7, %p3742_p5 }
  0x5b   : > { %p3414_p2 = pneg %p3413_p8 }
  0x5d   : > { %p3419_p12 = pnand %p3417_p4, %p3414_p2 }
  0x5f   : > { %3422 = shalt.err (!%p3419_p12)
}
  0x60   : > { %s3534_s18 = smov 128   ;;  %s3535_s26 = smov 8  }
  0x61   : > { %475 = dma.hbm_to_vmem [thread:$0]  (%p3742_p5), %s3753_s3, %s2291_s30, %s470_s15, %s3739_s20, %s3534_s18, %s3534_s18, %s3535_s26  }
  0x62 PF: > { %481 = sbr.rel (%p3665_p13) target bundleno = 1985 (0x7c1), region = 68  ;;  %s3782_s28 = sand.u32 (!%p3665_p13), 1, %s3509_s22  }
  0x63   : > { %s2293_s7 = sshll.u32 (!%p3665_p13), %s3782_s28, 4  ;;  %s484_s29 = scalar_lea.sflag (!%p3665_p13), [#allocation3], %s3782_s28 }
  0x64   : > { %s3788_s2 = scalar_lea.vmem (!%p3665_p13), [#allocation2], %s2293_s7 }
  0x67   : > { %3480 = dma.done.wait (%p3650_p6), %s484_s29, 256  }
  0x68   : > { %3482 = vsyncadd (%p3650_p6), %s484_s29, 4294967040  ;;  %p4525_p4 = scmp.eq.s32.totalorder %s3626_s25, 0 }
  0x6a   : > { %3484 = dma.done.wait (%p4525_p4), [#allocation6], 1216   ;;  %p4526_p12 = pmov %p4525_p4 }
  0x6b   : > { %p4527_p13 = pmov %p4525_p4 }
  0x6c   : > { %3486 = vsyncadd (%p4526_p12), [#allocation6], 4294966080 }
  0x6d   : > { %3488 = dma.done.wait (%p4527_p13), [#allocation9], 544   ;;  %p4528_p2 = pmov %p4525_p4 }
  0x6f   : > { %3490 = vsyncadd (%p4528_p2), [#allocation9], 4294966752  ;;  %p4529_p5 = pmov %p4528_p2 }
  0x70   : > { %p4530_p9 = pmov %p4528_p2 }
  0x71   : > { %3492 = dma.done.wait (%p4529_p5), [#allocation12], 3072  }
  0x72   : > { %3494 = vsyncadd (%p4530_p9), [#allocation12], 4294964224  ;;  %p4531_p6 = pmov %p4528_p2 }
  0x73   : > { %p4532_p10 = pmov %p4528_p2 }
  0x74   : > { %3496 = dma.done.wait (%p4531_p6), [#allocation15], 2048  }
  0x75   : > { %3498 = vsyncadd (%p4532_p10), [#allocation15], 4294965248  ;;  %v2329_v0 = vld [vmem:[#allocation7 + $0x30] sm:$0xf]  ;;  %v2867_v1 = vld [vmem:[#allocation7 + $0x34] sm:$0xf0] }
  0x76   : > { %v2866_v2 = vld [vmem:[#allocation7 + $0x34] sm:$0xf]  ;;  %v2330_v3 = vor.u32 %v2867_v1, %v2329_v0  ;;  %v2331_v4 = vld [vmem:[#allocation7 + $0x38] sm:$0xf0]  ;;  %v2321_v5 = vld [vmem:[#allocation7 + $0x20] sm:$0xf] }
  0x77   : > { %v2865_v6 = vld [vmem:[#allocation7 + $0x24] sm:$0xf0]  ;;  %v2334_v7 = vor.u32 %v2866_v2, %v2331_v4  ;;  %v2864_v8 = vld [vmem:[#allocation7 + $0x24] sm:$0xf]  ;;  %v2323_v9 = vld [vmem:[#allocation7 + $0x28] sm:$0xf0] }
  0x78   : > { %645 = vmatpush.bf16.msra.mxu0 %v2330_v3  ;;  %v2322_v10 = vor.u32 %v2865_v6, %v2321_v5  ;;  %v2326_v11 = vor.u32 %v2864_v8, %v2323_v9  ;;  %v2313_v12 = vld [vmem:[#allocation7 + $0x10] sm:$0xf]  ;;  %v2863_v13 = vld [vmem:[#allocation7 + $0x14] sm:$0xf0]  ;;  %v2862_v14 = vld [vmem:[#allocation7 + $0x14] sm:$0xf] }
  0x79   : > { %659 = vmatpush.bf16.msra.mxu1 %v2334_v7  ;;  %v2315_v15 = vld [vmem:[#allocation7 + $0x18] sm:$0xf0]  ;;  %v2314_v16 = vor.u32 %v2863_v13, %v2313_v12  ;;  %v2305_v18 = vld [vmem:[#allocation7] sm:$0xf]  ;;  %v2861_v19 = vld [vmem:[#allocation7 + $0x4] sm:$0xf0] }
  0x7a   : > { %v2318_v17 = vor.u32 %v2862_v14, %v2315_v15  ;;  %v2860_v20 = vld [vmem:[#allocation7 + $0x4] sm:$0xf]  ;;  %v2307_v21 = vld [vmem:[#allocation7 + $0x8] sm:$0xf0]  ;;  %v2306_v22 = vor.u32 %v2861_v19, %v2305_v18  ;;  %vm637_vm0 = vcmask 523264   ;;  %s3536_s27 = smov 64  }
  0x7b   : > { %v580_v23 = vld [vmem:[%s3788_s2] sm:$0xff]  ;;  %v581_v24 = vld [vmem:[%s3788_s2 + $0x8] sm:$0xff]  ;;  %v2310_v25 = vor.u32 %v2860_v20, %v2307_v21  ;;  %s568_s18 = scalar_lea.vmem [#allocation17], %s2293_s7  ;;  %s2103_s26 = scalar_lea.sflag [#allocation4], %s3782_s28 }
  0x7c   : > { %646 = vmatpush.bf16.msra.mxu0 %v2322_v10  ;;  %v3812_v26 = vpack.c.bf16 %v581_v24, %v580_v23  ;;  %v2483_v27 = vld [vmem:[%s4484_s1 + $0x120] sm:$0xf]  ;;  %v2910_v28 = vld [vmem:[%s4484_s1 + $0x14c] sm:$0xf0]  ;;  %v591_v43 = vld [vmem:[#allocation8] sm:$0x3] }
  0x7d   : > { %660 = vmatpush.bf16.msra.mxu1 %v2326_v11  ;;  %v2435_v29 = vld [vmem:[%s4484_s1 + $0xc0] sm:$0xf]  ;;  %v2484_v30 = vor.u32 %v2910_v28, %v2483_v27  ;;  %v2898_v31 = vld [vmem:[%s4484_s1 + $0xec] sm:$0xf0]  ;;  %v593_v47 = vperm.slane %v591_v43, 0  ;;  %v594_v57 = vperm.slane %v591_v43, 1 }
  0x7e   : > { %v2436_v32 = vor.u32 %v2898_v31, %v2435_v29  ;;  %v2387_v33 = vld [vmem:[%s4484_s1 + $0x60] sm:$0xf]  ;;  %v2886_v34 = vld [vmem:[%s4484_s1 + $0x8c] sm:$0xf0]  ;;  %v2923_v12 = vld [vmem:[#allocation13 + $0x38] sm:$0xff]  ;;  %s2851_s29 = sshll.u32 (%p3657_p11), %s3626_s25, 1 }
  0x7f   : > { %989 = vmatpush.bf16.msra.mxu2 %v2484_v30  ;;  %v2388_v35 = vor.u32 %v2886_v34, %v2387_v33  ;;  %v2339_v36 = vld [vmem:[%s4484_s1] sm:$0xf]  ;;  %v2874_v37 = vld [vmem:[%s4484_s1 + $0x2c] sm:$0xf0]  ;;  %v2921_v14 = vld [vmem:[#allocation13 + $0x28] sm:$0xff]  ;;  %s2111_s2 = ssub.s32 (%p3657_p11), 3, %s2851_s29 }
  0x80   : > { %647 = vmatpush.bf16.msra.mxu0 %v2314_v16  ;;  %v2499_v38 = vld [vmem:[%s4484_s1 + $0x130] sm:$0xf]  ;;  %v2912_v39 = vld [vmem:[%s4484_s1 + $0x15c] sm:$0xf0]  ;;  %v2340_v41 = vor.u32 %v2874_v37, %v2339_v36  ;;  %v2919_v16 = vld [vmem:[#allocation13 + $0x18] sm:$0xff]  ;;  %p2112_p1 = scmp.lt.s32.totalorder (%p3657_p11), %s2111_s2, 2 }
  0x81   : > { %661 = vmatpush.bf16.msra.mxu1 %v2318_v17  ;;  %v2500_v42 = vor.u32 %v2912_v39, %v2499_v38  ;;  %v2451_v45 = vld [vmem:[%s4484_s1 + $0xd0] sm:$0xf]  ;;  %v2900_v46 = vld [vmem:[%s4484_s1 + $0xfc] sm:$0xf0]  ;;  %v2917_v18 = vld [vmem:[#allocation13 + $0x8] sm:$0xff] }
  0x82   : > { %v2452_v48 = vor.u32 %v2900_v46, %v2451_v45  ;;  %v2403_v49 = vld [vmem:[%s4484_s1 + $0x70] sm:$0xf]  ;;  %v2888_v50 = vld [vmem:[%s4484_s1 + $0x9c] sm:$0xf0]  ;;  %v2892_v43 = vld [vmem:[%s4484_s1 + $0xc4] sm:$0xf] }
  0x83   : > { %990 = vmatpush.bf16.msra.mxu2 %v2436_v32  ;;  %v2404_v54 = vor.u32 %v2888_v50, %v2403_v49  ;;  %v2355_v55 = vld [vmem:[%s4484_s1 + $0x10] sm:$0xf]  ;;  %v2876_v56 = vld [vmem:[%s4484_s1 + $0x3c] sm:$0xf0]  ;;  %v2437_v45 = vld [vmem:[%s4484_s1 + $0xf0] sm:$0xf0] }
  0x84   : > { %648 = vmatpush.bf16.msra.mxu0 %v2306_v22  ;;  %v2515_v59 = vld [vmem:[%s4484_s1 + $0x140] sm:$0xf]  ;;  %v2914_v60 = vld [vmem:[%s4484_s1 + $0x16c] sm:$0xf0]  ;;  %v2356_v62 = vor.u32 %v2876_v56, %v2355_v55  ;;  %v2440_v46 = vor.u32 %v2892_v43, %v2437_v45  ;;  %v2868_v50 = vld [vmem:[%s4484_s1 + $0x4] sm:$0xf] }
  0x85   : > { %662 = vmatpush.bf16.msra.mxu1 %v2310_v25  ;;  %v2516_v63 = vor.u32 %v2914_v60, %v2515_v59  ;;  %v2467_v2 = vld [vmem:[%s4484_s1 + $0xe0] sm:$0xf]  ;;  %v2902_v3 = vld [vmem:[%s4484_s1 + $0x10c] sm:$0xf0]  ;;  %v2501_v55 = vld [vmem:[%s4484_s1 + $0x160] sm:$0xf0] }
  0x86   : > { %v2468_v4 = vor.u32 %v2902_v3, %v2467_v2  ;;  %v2419_v6 = vld [vmem:[%s4484_s1 + $0x80] sm:$0xf]  ;;  %v2890_v7 = vld [vmem:[%s4484_s1 + $0xac] sm:$0xf0]  ;;  %v2894_v59 = vld [vmem:[%s4484_s1 + $0xd4] sm:$0xf] }
  0x87   : > { %2335 = vmatmul.msk.bf16.vlgmr.msra.gmra.mxu0 %vm637_vm0, %v3812_v26  ;;  %991 = vmatpush.bf16.msra.mxu2 %v2388_v35  ;;  %v2420_v8 = vor.u32 %v2890_v7, %v2419_v6  ;;  %v2371_v9 = vld [vmem:[%s4484_s1 + $0x20] sm:$0xf]  ;;  %v2878_v10 = vld [vmem:[%s4484_s1 + $0x4c] sm:$0xf0]  ;;  %v2453_v60 = vld [vmem:[%s4484_s1 + $0x100] sm:$0xf0] }
  0x88   : > { %2336 = vmatmul.msk.bf16.vlgmr.msra.gmra.mxu1 %vm637_vm0, %v3812_v26  ;;  %v2372_v11 = vor.u32 %v2878_v10, %v2371_v9  ;;  %v2922_v13 = vld [vmem:[#allocation13 + $0x30] sm:$0xff]  ;;  %v2920_v15 = vld [vmem:[#allocation13 + $0x20] sm:$0xff] }
  0x89   : > { %v2918_v17 = vld [vmem:[#allocation13 + $0x10] sm:$0xff]  ;;  %v2916_v19 = vld [vmem:[#allocation13] sm:$0xff] }
  0x8a   : > { %v3911_v27 = vld [vmem:[#allocation5] sm:$0xff]  ;;  %v2870_v6 = vld [vmem:[%s4484_s1 + $0x14] sm:$0xf] }
  0x8b   : > { %992 = vmatpush.bf16.msra.mxu2 %v2340_v41  ;;  %v721_v28 = vperm.slane %v3911_v27, 0  ;;  %v725_v29 = vperm.slane %v3911_v27, 4  ;;  %v2904_v41 = vld [vmem:[%s4484_s1 + $0x124] sm:$0xf]  ;;  %v2517_v10 = vld [vmem:[%s4484_s1 + $0x170] sm:$0xf0] }
  0x8c   : > { %v2357_v7 = vld [vmem:[%s4484_s1 + $0x40] sm:$0xf0]  ;;  %v722_v43 = vperm.slane %v3911_v27, 1 }
  0x8d   : > { %v2908_v9 = vld [vmem:[%s4484_s1 + $0x144] sm:$0xf] }
  0x8e   : > { %2529 = vmatmul.msk.bf16.vlgmr.msra.gmra.mxu2 %vm637_vm0, %v3812_v26 }
  0x8f   : > { %1045 = vmatpush.bf16.msrb.mxu2 %v2500_v42  ;;  %v2485_v42 = vld [vmem:[%s4484_s1 + $0x150] sm:$0xf0] }
  0x93   : > { %1046 = vmatpush.bf16.msrb.mxu2 %v2452_v48  ;;  %v2389_v48 = vld [vmem:[%s4484_s1 + $0x90] sm:$0xf0] }
  0x97   : > { %1047 = vmatpush.bf16.msrb.mxu2 %v2404_v54  ;;  %v2906_v54 = vld [vmem:[%s4484_s1 + $0x134] sm:$0xf] }
  0x9b   : > { %1048 = vmatpush.bf16.msrb.mxu2 %v2356_v62  ;;  %v2882_v62 = vld [vmem:[%s4484_s1 + $0x74] sm:$0xf] }
  0x9e   : > { %2533 = vmatmul.msk.bf16.vlgmr.msrb.gmra.mxu2 %vm637_vm0, %v3812_v26 }
  0x9f   : > { %1101 = vmatpush.bf16.msra.mxu2 %v2516_v63  ;;  %v2405_v63 = vld [vmem:[%s4484_s1 + $0xa0] sm:$0xf0] }
  0xa3   : > { %1102 = vmatpush.bf16.msra.mxu2 %v2468_v4 }
  0xa7   : > { %1103 = vmatpush.bf16.msra.mxu2 %v2420_v8 }
  0xab   : > { %1104 = vmatpush.bf16.msra.mxu2 %v2372_v11  ;;  %v2360_v11 = vor.u32 %v2870_v6, %v2357_v7  ;;  %v2347_v7 = vld [vmem:[%s4484_s1 + $0x8] sm:$0xf] }
  0xae   : > { %2537 = vmatmul.msk.bf16.vlgmr.msra.gmra.mxu2 %vm637_vm0, %v3812_v26 }
  0xaf   : > { %1228 = vmatpush.bf16.msrb.mxu2 %v2923_v12  ;;  %v2520_v12 = vor.u32 %v2908_v9, %v2517_v10  ;;  %v2507_v9 = vld [vmem:[%s4484_s1 + $0x138] sm:$0xf]  ;;  %v2913_v10 = vld [vmem:[%s4484_s1 + $0x164] sm:$0xf0] }
  0xb3   : > { %1229 = vmatpush.bf16.msrb.mxu2 %v2922_v13 }
  0xb7   : > { %1230 = vmatpush.bf16.msrb.mxu2 %v2921_v14  ;;  %v2896_v14 = vld [vmem:[%s4484_s1 + $0xe4] sm:$0xf] }
  0xbb   : > { %1231 = vmatpush.bf16.msrb.mxu2 %v2920_v15  ;;  %v2469_v15 = vld [vmem:[%s4484_s1 + $0x110] sm:$0xf0] }
  0xbf   : > { %1232 = vmatpush.bf16.msrb.mxu2 %v2919_v16 }
  0xc3   : > { %1233 = vmatpush.bf16.msrb.mxu2 %v2918_v17  ;;  %v2472_v17 = vor.u32 %v2896_v14, %v2469_v15  ;;  %v2459_v14 = vld [vmem:[%s4484_s1 + $0xd8] sm:$0xf]  ;;  %v2901_v15 = vld [vmem:[%s4484_s1 + $0x104] sm:$0xf0] }
  0xc7   : > { %1234 = vmatpush.bf16.msrb.mxu2 %v2917_v18 }
  0xcb   : > { %1235 = vmatpush.bf16.msrb.mxu2 %v2916_v19  ;;  %v2421_v19 = vld [vmem:[%s4484_s1 + $0xb0] sm:$0xf0] }
 0x104   : > { %v650_v40 = vpop.f32.mrf.mxu0 }
 0x105   : > { %v664_v44 = vpop.f32.mrf.mxu1  ;;  %v3862_v52 = vadd.f32 %v650_v40, %v593_v47 }
 0x106   : > { %v3881_v0 = vadd.f32 %v664_v44, %v594_v57  ;;  %v2488_v44 = vor.u32 %v2904_v41, %v2485_v42 }
 0x107   : > { %vm1456_vm2 = vcmp.ge.f32.partialorder %v3862_v52, 0.0 }
 0x108   : > { %1003 = vmatpush.bf16.msra.mxu3 %v2488_v44  ;;  %v726_v44 = vperm.slane %v3911_v27, 5 }
 0x10c   : > { %v652_v51 = vpop.f32.mrf.mxu0  ;;  %1004 = vmatpush.bf16.msra.mxu3 %v2440_v46 }
 0x10d   : > { %v3864_v53 = vadd.f32 %v652_v51, %v593_v47  ;;  %v666_v61 = vpop.f32.mrf.mxu1  ;;  %v2880_v47 = vld [vmem:[%s4484_s1 + $0x64] sm:$0xf]  ;;  %v2341_v51 = vld [vmem:[%s4484_s1 + $0x30] sm:$0xf0] }
 0x10e   : > { %v3883_v1 = vadd.f32 %v666_v61, %v594_v57  ;;  %v2392_v49 = vor.u32 %v2880_v47, %v2389_v48  ;;  %v2344_v57 = vor.u32 %v2868_v50, %v2341_v51  ;;  %v2456_v61 = vor.u32 %v2894_v59, %v2453_v60  ;;  %v2911_v59 = vld [vmem:[%s4484_s1 + $0x154] sm:$0xf0]  ;;  %v2443_v60 = vld [vmem:[%s4484_s1 + $0xc8] sm:$0xf] }
 0x10f   : > { %v1153_v58 = vpack.c.bf16 %v3864_v53, %v3862_v52  ;;  %vm1457_vm1 = vcmp.ge.f32.partialorder %v3864_v53, 0.0 }
 0x110   : > { %v1154_v5 = vpack.c.bf16 %v3883_v1, %v3881_v0  ;;  %1005 = vmatpush.bf16.msra.mxu3 %v2392_v49 }
 0x111   : > { %1173 = vrot.lane.b32.xlu0 %v1153_v58, %s3536_s27  ;;  %v994_v23 = vpop.f32.mrf.mxu2  ;;  %v2504_v58 = vor.u32 %v2906_v54, %v2501_v55 }
 0x112   : > { %v995_v31 = vadd.f32 %v994_v23, %v721_v28  ;;  %v2931_v23 = vld [vmem:[#allocation14 + $0x38] sm:$0xff] }
 0x114   : > { %1006 = vmatpush.bf16.msra.mxu3 %v2344_v57 }
 0x117   : > { %2530 = vmatmul.msk.bf16.vlgmr.msra.gmra.mxu3 %vm637_vm0, %v3812_v26 }
 0x118   : > { %1059 = vmatpush.bf16.msrb.mxu3 %v2504_v58  ;;  %v2491_v58 = vld [vmem:[%s4484_s1 + $0x128] sm:$0xf] }
 0x119   : > { %1175 = vrot.lane.b32.xlu0 %v1154_v5, %s3536_s27  ;;  %v996_v24 = vpop.f32.mrf.mxu2  ;;  %v2408_v5 = vor.u32 %v2882_v62, %v2405_v63  ;;  %v2899_v62 = vld [vmem:[%s4484_s1 + $0xf4] sm:$0xf0] }
 0x11a   : > { %v997_v32 = vadd.f32 %v996_v24, %v721_v28  ;;  %v2930_v24 = vld [vmem:[#allocation14 + $0x30] sm:$0xff]  ;;  %v2928_v28 = vld [vmem:[#allocation14 + $0x20] sm:$0xff]  ;;  %v2444_v63 = vor.u32 %v2899_v62, %v2443_v60 }
 0x11c   : > { %1060 = vmatpush.bf16.msrb.mxu3 %v2456_v61  ;;  %v2492_v61 = vor.u32 %v2911_v59, %v2491_v58 }
 0x11e   : > { %1017 = vmatpush.bf16.msrb.mxu0 %v2492_v61 }
 0x120   : > { %1061 = vmatpush.bf16.msrb.mxu3 %v2408_v5  ;;  %v2887_v5 = vld [vmem:[%s4484_s1 + $0x94] sm:$0xf0] }
 0x121   : > { %v1050_v25 = vpop.f32.mrf.mxu2 }
 0x122   : > { %v1051_v33 = vadd.f32 %v1050_v25, %v725_v29  ;;  %v2929_v25 = vld [vmem:[#allocation14 + $0x28] sm:$0xff]  ;;  %1018 = vmatpush.bf16.msrb.mxu0 %v2444_v63 }
 0x124   : > { %v3915_v35 = vmul.f32 %v1051_v33, %v995_v31  ;;  %1062 = vmatpush.bf16.msrb.mxu3 %v2360_v11  ;;  %v2925_v31 = vld [vmem:[#allocation14 + $0x8] sm:$0xff] }
 0x127   : > { %2534 = vmatmul.msk.bf16.vlgmr.msrb.gmra.mxu3 %vm637_vm0, %v3812_v26 }
 0x128   : > { %1115 = vmatpush.bf16.msra.mxu3 %v2520_v12  ;;  %v2508_v12 = vor.u32 %v2913_v10, %v2507_v9 }
 0x129   : > { %v1052_v30 = vpop.f32.mrf.mxu2 }
 0x12a   : > { %v1053_v34 = vadd.f32 %v1052_v30, %v725_v29  ;;  %v2927_v29 = vld [vmem:[#allocation14 + $0x18] sm:$0xff]  ;;  %v2926_v30 = vld [vmem:[#allocation14 + $0x10] sm:$0xff] }
 0x12c   : > { %v3917_v36 = vmul.f32 %v1053_v34, %v997_v32  ;;  %1116 = vmatpush.bf16.msra.mxu3 %v2472_v17  ;;  %v2924_v32 = vld [vmem:[#allocation14] sm:$0xff]  ;;  %v2460_v17 = vor.u32 %v2901_v15, %v2459_v14 }
 0x131   : > { %v3919_v37 = vpop.f32.mrf.mxu2 }
 0x139   : > { %v3921_v38 = vpop.f32.mrf.mxu2 }
 0x183   : > { %v1174_v20 = vpop.permute.xlu0 %1173 }
 0x18b   : > { %v1176_v21 = vpop.permute.xlu0 %1175 }
 0x18c   : > { %v1178_v22 = vsel %vm637_vm0, %v1174_v20, %v1176_v21  ;;  %v2373_v21 = vld [vmem:[%s4484_s1 + $0x50] sm:$0xf0] }
 0x18d   : > { %1236 = vmatmul.bf16.vlgmr.msrb.gmra.mxu2 %v1178_v22 }
 0x210   : > { %v1237_v39 = vpop.f32.mrf.mxu2 }
 0x211   : > { %1244 = vrot.lane.b32.xlu1 %v1237_v39, %s3536_s27 }
 0x218   : > { %v1239_v40 = vpop.f32.mrf.mxu2 }
 0x219   : > { %1246 = vrot.lane.b32.xlu1 %v1239_v40, %s3536_s27  ;;  %v1008_v40 = vpop.f32.mrf.mxu3 }
 0x21a   : > { %v1009_v46 = vadd.f32 %v1008_v40, %v722_v43 }
 0x221   : > { %v1010_v41 = vpop.f32.mrf.mxu3 }
 0x222   : > { %v1011_v47 = vadd.f32 %v1010_v41, %v722_v43 }
 0x229   : > { %v1064_v42 = vpop.f32.mrf.mxu3 }
 0x22a   : > { %v1065_v48 = vadd.f32 %v1064_v42, %v726_v44  ;;  %v2879_v42 = vld [vmem:[%s4484_s1 + $0x54] sm:$0xf0] }
 0x22c   : > { %v4024_v50 = vmul.f32 %v1065_v48, %v1009_v46  ;;  %v2937_v46 = vld [vmem:[#allocation16 + $0x28] sm:$0xff]  ;;  %v2935_v48 = vld [vmem:[#allocation16 + $0x18] sm:$0xff] }
 0x231   : > { %v1066_v45 = vpop.f32.mrf.mxu3 }
 0x232   : > { %v1067_v49 = vadd.f32 %v1066_v45, %v726_v44  ;;  %v2939_v44 = vld [vmem:[#allocation16 + $0x38] sm:$0xff]  ;;  %v2938_v45 = vld [vmem:[#allocation16 + $0x30] sm:$0xff] }
 0x234   : > { %v4026_v51 = vmul.f32 %v1067_v49, %v1011_v47  ;;  %v2936_v47 = vld [vmem:[#allocation16 + $0x20] sm:$0xff]  ;;  %v2934_v49 = vld [vmem:[#allocation16 + $0x10] sm:$0xff] }
 0x283   : > { %v1245_v56 = vpop.permute.xlu1 %1244 }
 0x284   : > { %v3970_v3 = vmax.f32 %v3862_v52, %v1245_v56  ;;  %v4000_v16 = vmax.f32 %v3881_v0, %v1245_v56  ;;  %v2872_v0 = vld [vmem:[%s4484_s1 + $0x24] sm:$0xf] }
 0x285   : > { %v2376_v22 = vor.u32 %v2872_v0, %v2373_v21  ;;  %v2877_v0 = vld [vmem:[%s4484_s1 + $0x44] sm:$0xf0] }
 0x286   : > { %v2523_v21 = vld [vmem:[%s4484_s1 + $0x148] sm:$0xf] }
 0x28b   : > { %v1247_v2 = vpop.permute.xlu1 %1246 }
 0x28c   : > { %v3973_v4 = vmax.f32 %v3864_v53, %v1247_v2  ;;  %v3991_v13 = vmax.f32 %v3883_v1, %v1247_v2  ;;  %v2884_v1 = vld [vmem:[%s4484_s1 + $0x84] sm:$0xf]  ;;  %v2395_v2 = vld [vmem:[%s4484_s1 + $0x68] sm:$0xf] }
 0x28d   : > { %v2424_v20 = vor.u32 %v2884_v1, %v2421_v19  ;;  %v2396_v6 = vor.u32 %v2887_v5, %v2395_v2  ;;  %v2889_v1 = vld [vmem:[%s4484_s1 + $0xa4] sm:$0xf0]  ;;  %v723_v2 = vperm.slane %v3911_v27, 2  ;;  %v727_v5 = vperm.slane %v3911_v27, 6 }
 0x28e   : > { %v1254_v8 = vpack.c.bf16 %v3973_v4, %v3970_v3  ;;  %v1255_v18 = vpack.c.bf16 %v3991_v13, %v4000_v16 }
 0x28f   : > { %1117 = vmatpush.bf16.msra.mxu3 %v2424_v20  ;;  %1019 = vmatpush.bf16.msrb.mxu0 %v2396_v6  ;;  %v2363_v20 = vld [vmem:[%s4484_s1 + $0x18] sm:$0xf] }
 0x290   : > { %1274 = vrot.lane.b32.xlu2 %v1254_v8, %s3536_s27  ;;  %v2875_v8 = vld [vmem:[%s4484_s1 + $0x34] sm:$0xf0] }
 0x291   : > { %v2348_v11 = vor.u32 %v2875_v8, %v2347_v7 }
 0x293   : > { %1118 = vmatpush.bf16.msra.mxu3 %v2376_v22  ;;  %1020 = vmatpush.bf16.msrb.mxu0 %v2348_v11  ;;  %v2915_v22 = vld [vmem:[%s4484_s1 + $0x174] sm:$0xf0] }
 0x296   : > { %2538 = vmatmul.msk.bf16.vlgmr.msra.gmra.mxu3 %vm637_vm0, %v3812_v26  ;;  %2531 = vmatmul.msk.bf16.vlgmr.msrb.gmra.mxu0 %vm637_vm0, %v3812_v26 }
 0x297   : > { %1328 = vmatpush.bf16.msrb.mxu3 %v2931_v23  ;;  %1073 = vmatpush.bf16.msra.mxu0 %v2508_v12  ;;  %v2364_v23 = vor.u32 %v2877_v0, %v2363_v20  ;;  %v2893_v20 = vld [vmem:[%s4484_s1 + $0xcc] sm:$0xf] }
 0x298   : > { %1276 = vrot.lane.b32.xlu2 %v1255_v18, %s3536_s27  ;;  %v2411_v18 = vld [vmem:[%s4484_s1 + $0x78] sm:$0xf] }
 0x299   : > { %v2412_v19 = vor.u32 %v2889_v1, %v2411_v18  ;;  %v2905_v1 = vld [vmem:[%s4484_s1 + $0x12c] sm:$0xf] }
 0x29b   : > { %1329 = vmatpush.bf16.msrb.mxu3 %v2930_v24  ;;  %1074 = vmatpush.bf16.msra.mxu0 %v2460_v17 }
 0x29f   : > { %1330 = vmatpush.bf16.msrb.mxu3 %v2929_v25  ;;  %1075 = vmatpush.bf16.msra.mxu0 %v2412_v19  ;;  %v2524_v25 = vor.u32 %v2915_v22, %v2523_v21  ;;  %v2493_v19 = vld [vmem:[%s4484_s1 + $0x158] sm:$0xf0] }
 0x2a0   : > { %v2496_v0 = vor.u32 %v2905_v1, %v2493_v19  ;;  %v2445_v21 = vld [vmem:[%s4484_s1 + $0xf8] sm:$0xf0]  ;;  %v2697_v1 = vld [vmem:[#allocation11 + $0x78] sm:$0xf0] }
 0x2a1   : > { %v2448_v22 = vor.u32 %v2893_v20, %v2445_v21  ;;  %v2950_v21 = vld [vmem:[#allocation11 + $0x4c] sm:$0xf0] }
 0x2a2   : > { %1031 = vmatpush.bf16.msrb.mxu1 %v2496_v0  ;;  %v2671_v0 = vld [vmem:[#allocation11 + $0x40] sm:$0xf] }
 0x2a3   : > { %1331 = vmatpush.bf16.msrb.mxu3 %v2928_v28  ;;  %v2475_v28 = vld [vmem:[%s4484_s1 + $0xe8] sm:$0xf]  ;;  %1076 = vmatpush.bf16.msra.mxu0 %v2364_v23  ;;  %v2881_v23 = vld [vmem:[%s4484_s1 + $0x6c] sm:$0xf] }
 0x2a6   : > { %2535 = vmatmul.msk.bf16.vlgmr.msra.gmra.mxu0 %vm637_vm0, %v3812_v26  ;;  %1032 = vmatpush.bf16.msrb.mxu1 %v2448_v22  ;;  %v2679_v22 = vld [vmem:[#allocation11 + $0x48] sm:$0xf] }
 0x2a7   : > { %1332 = vmatpush.bf16.msrb.mxu3 %v2927_v29  ;;  %v2903_v29 = vld [vmem:[%s4484_s1 + $0x114] sm:$0xf0]  ;;  %1129 = vmatpush.bf16.msrb.mxu0 %v2524_v25 }
 0x2ab   : > { %1333 = vmatpush.bf16.msrb.mxu3 %v2926_v30 }
 0x2af   : > { %1334 = vmatpush.bf16.msrb.mxu3 %v2925_v31 }
 0x2b3   : > { %1335 = vmatpush.bf16.msrb.mxu3 %v2924_v32 }
 0x2ea   : > { %v1275_v33 = vpop.permute.xlu2 %1274 }
 0x2f2   : > { %v1277_v34 = vpop.permute.xlu2 %1276 }
 0x2f3   : > { %v1278_v39 = vsel %vm637_vm0, %v1275_v33, %v1277_v34 }
 0x2f4   : > { %1336 = vmatmul.bf16.vlgmr.msrb.gmra.mxu3 %v1278_v39  ;;  %v2476_v39 = vor.u32 %v2903_v29, %v2475_v28  ;;  %v2869_v28 = vld [vmem:[%s4484_s1 + $0xc] sm:$0xf]  ;;  %v2349_v29 = vld [vmem:[%s4484_s1 + $0x38] sm:$0xf0] }
 0x2f6   : > { %1130 = vmatpush.bf16.msrb.mxu0 %v2476_v39  ;;  %v2509_v39 = vld [vmem:[%s4484_s1 + $0x168] sm:$0xf0] }
 0x313   : > { %v1022_v61 = vpop.f32.mrf.mxu0 }
 0x314   : > { %v1023_v7 = vadd.f32 %v1022_v61, %v723_v2 }
 0x319   : > { %v4028_v54 = vpop.f32.mrf.mxu3 }
 0x31b   : > { %v1024_v62 = vpop.f32.mrf.mxu0 }
 0x31c   : > { %v1025_v8 = vadd.f32 %v1024_v62, %v723_v2  ;;  %v2885_v62 = vld [vmem:[%s4484_s1 + $0x8c] sm:$0xf] }
 0x321   : > { %v4030_v55 = vpop.f32.mrf.mxu3 }
 0x323   : > { %v1078_v63 = vpop.f32.mrf.mxu0 }
 0x324   : > { %v1079_v9 = vadd.f32 %v1078_v63, %v727_v5  ;;  %v2429_v63 = vld [vmem:[%s4484_s1 + $0xb8] sm:$0xf0] }
 0x325   : > { %v2432_v2 = vor.u32 %v2885_v62, %v2429_v63  ;;  %v2948_v62 = vld [vmem:[#allocation11 + $0x44] sm:$0xf]  ;;  %v2673_v63 = vld [vmem:[#allocation11 + $0x50] sm:$0xf0] }
 0x326   : > { %v4133_v11 = vmul.f32 %v1079_v9, %v1023_v7  ;;  %v2687_v7 = vld [vmem:[#allocation11 + $0x60] sm:$0xf]  ;;  %v2695_v9 = vld [vmem:[#allocation11 + $0x68] sm:$0xf] }
 0x32b   : > { %v1080_v6 = vpop.f32.mrf.mxu0 }
 0x32c   : > { %v1081_v10 = vadd.f32 %v1080_v6, %v727_v5  ;;  %v2873_v5 = vld [vmem:[%s4484_s1 + $0x2c] sm:$0xf] }
 0x32e   : > { %v4135_v12 = vmul.f32 %v1081_v10, %v1025_v8  ;;  %v2954_v8 = vld [vmem:[#allocation11 + $0x6c] sm:$0xf0] }
 0x32f   : > { %v2688_v10 = vor.u32 %v2954_v8, %v2687_v7  ;;  %v2940_v7 = vld [vmem:[#allocation11 + $0x4] sm:$0xf]  ;;  %v2641_v8 = vld [vmem:[#allocation11 + $0x10] sm:$0xf0] }
 0x377   : > { %v1337_v56 = vpop.f32.mrf.mxu3 }
 0x378   : > { %1344 = vrot.lane.b32.xlu0 %v1337_v56, %s3536_s27  ;;  %v2933_v56 = vld [vmem:[#allocation16 + $0x8] sm:$0xff] }
 0x37f   : > { %v1339_v57 = vpop.f32.mrf.mxu3 }
 0x380   : > { %1346 = vrot.lane.b32.xlu1 %v1339_v57, %s3536_s27  ;;  %v2932_v57 = vld [vmem:[#allocation16] sm:$0xff] }
 0x3ea   : > { %v1345_v24 = vpop.permute.xlu0 %1344 }
 0x3eb   : > { %v4097_v31 = vmax.f32 %v3970_v3, %v1345_v24  ;;  %v4100_v32 = vmax.f32 %v4000_v16, %v1345_v24  ;;  %v2427_v3 = vld [vmem:[%s4484_s1 + $0x88] sm:$0xf]  ;;  %v2397_v24 = vld [vmem:[%s4484_s1 + $0x98] sm:$0xf0] }
 0x3ec   : > { %v2379_v16 = vld [vmem:[%s4484_s1 + $0x28] sm:$0xf]  ;;  %v2400_v25 = vor.u32 %v2881_v23, %v2397_v24  ;;  %v2672_v23 = vor.u32 %v2950_v21, %v2671_v0 }
 0x3ed   : > { %v2380_v43 = vor.u32 %v2879_v42, %v2379_v16  ;;  %v2951_v24 = vld [vmem:[#allocation11 + $0x54] sm:$0xf0] }
 0x3ee   : > { %1033 = vmatpush.bf16.msrb.mxu1 %v2400_v25  ;;  %v2949_v25 = vld [vmem:[#allocation11 + $0x4c] sm:$0xf] }
 0x3f2   : > { %v1347_v30 = vpop.permute.xlu1 %1346 }
 0x3f3   : > { %v4103_v33 = vmax.f32 %v3973_v4, %v1347_v30  ;;  %v4106_v34 = vmax.f32 %v3991_v13, %v1347_v30  ;;  %v2891_v4 = vld [vmem:[%s4484_s1 + $0xb4] sm:$0xf0]  ;;  %v2907_v30 = vld [vmem:[%s4484_s1 + $0x13c] sm:$0xf] }
 0x3f4   : > { %v2428_v13 = vor.u32 %v2891_v4, %v2427_v3  ;;  %v2895_v4 = vld [vmem:[%s4484_s1 + $0xdc] sm:$0xf] }
 0x3f5   : > { %v1354_v40 = vpack.c.bf16 %v4103_v33, %v4097_v31  ;;  %v1355_v41 = vpack.c.bf16 %v4106_v34, %v4100_v32 }
 0x3f6   : > { %1131 = vmatpush.bf16.msrb.mxu0 %v2428_v13  ;;  %v2461_v13 = vld [vmem:[%s4484_s1 + $0x108] sm:$0xf0] }
 0x3f7   : > { %1376 = vrot.lane.b32.xlu0 %v1355_v41, %s3536_s27  ;;  %1374 = vrot.lane.b32.xlu2 %v1354_v40, %s3536_s27  ;;  %v2352_v40 = vor.u32 %v2869_v28, %v2349_v29  ;;  %v2512_v41 = vor.u32 %v2907_v30, %v2509_v39  ;;  %v2464_v42 = vor.u32 %v2895_v4, %v2461_v13  ;;  %v2681_v28 = vld [vmem:[#allocation11 + $0x58] sm:$0xf0]  ;;  %v2655_v30 = vld [vmem:[#allocation11 + $0x20] sm:$0xf]  ;;  %v2946_v39 = vld [vmem:[#allocation11 + $0x2c] sm:$0xf0] }
 0x3f8   : > { %v2684_v29 = vor.u32 %v2949_v25, %v2681_v28  ;;  %v2945_v4 = vld [vmem:[#allocation11 + $0x2c] sm:$0xf]  ;;  %v2665_v13 = vld [vmem:[#allocation11 + $0x38] sm:$0xf0]  ;;  %v2986_v25 = vld [vmem:[%s4491_s8 + $0xf0] sm:$0xff] }
 0x3f9   : > { %1034 = vmatpush.bf16.msrb.mxu1 %v2352_v40  ;;  %v2663_v40 = vld [vmem:[#allocation11 + $0x28] sm:$0xf]  ;;  %v2960_v28 = vld [vmem:[%s4491_s8 + $0x20] sm:$0xff] }
 0x3fa   : > { %1132 = vmatpush.bf16.msrb.mxu0 %v2380_v43  ;;  %v2883_v43 = vld [vmem:[%s4484_s1 + $0x7c] sm:$0xf] }
 0x3fc   : > { %2532 = vmatmul.msk.bf16.vlgmr.msrb.gmra.mxu1 %vm637_vm0, %v3812_v26 }
 0x3fd   : > { %2539 = vmatmul.msk.bf16.vlgmr.msrb.gmra.mxu0 %vm637_vm0, %v3812_v26  ;;  %1087 = vmatpush.bf16.msra.mxu1 %v2512_v41  ;;  %v2947_v41 = vld [vmem:[#allocation11 + $0x34] sm:$0xf0] }
 0x3fe   : > { %1428 = vmatpush.bf16.msra.mxu0 %v2939_v44  ;;  %v2413_v44 = vld [vmem:[%s4484_s1 + $0xa8] sm:$0xf0] }
 0x401   : > { %1088 = vmatpush.bf16.msra.mxu1 %v2464_v42  ;;  %v2664_v42 = vor.u32 %v2947_v41, %v2663_v40  ;;  %v2959_v40 = vld [vmem:[%s4491_s8 + $0x18] sm:$0xff]  ;;  %v2976_v41 = vld [vmem:[%s4491_s8 + $0xa0] sm:$0xff] }
 0x402   : > { %1429 = vmatpush.bf16.msra.mxu0 %v2938_v45  ;;  %v2416_v45 = vor.u32 %v2883_v43, %v2413_v44  ;;  %v2668_v43 = vor.u32 %v2945_v4, %v2665_v13  ;;  %v2639_v44 = vld [vmem:[#allocation11] sm:$0xf]  ;;  %v2984_v4 = vld [vmem:[%s4491_s8 + $0xe0] sm:$0xff] }
 0x403   : > { %v2958_v13 = vld [vmem:[%s4491_s8 + $0x10] sm:$0xff] }
 0x405   : > { %1089 = vmatpush.bf16.msra.mxu1 %v2416_v45  ;;  %v2942_v45 = vld [vmem:[#allocation11 + $0xc] sm:$0xf0] }
 0x406   : > { %1430 = vmatpush.bf16.msra.mxu0 %v2937_v46  ;;  %v2365_v46 = vld [vmem:[%s4484_s1 + $0x48] sm:$0xf0] }
 0x40a   : > { %1431 = vmatpush.bf16.msra.mxu0 %v2936_v47  ;;  %v2909_v47 = vld [vmem:[%s4484_s1 + $0x14c] sm:$0xf] }
 0x40e   : > { %1432 = vmatpush.bf16.msra.mxu0 %v2935_v48  ;;  %v2525_v48 = vld [vmem:[%s4484_s1 + $0x178] sm:$0xf0] }
 0x412   : > { %1433 = vmatpush.bf16.msra.mxu0 %v2934_v49 }
 0x416   : > { %1434 = vmatpush.bf16.msra.mxu0 %v2933_v56  ;;  %v2528_v56 = vor.u32 %v2909_v47, %v2525_v48  ;;  %v2943_v47 = vld [vmem:[#allocation11 + $0x14] sm:$0xf0]  ;;  %v2941_v48 = vld [vmem:[#allocation11 + $0xc] sm:$0xf] }
 0x41a   : > { %1435 = vmatpush.bf16.msra.mxu0 %v2932_v57  ;;  %v2897_v57 = vld [vmem:[%s4484_s1 + $0xec] sm:$0xf] }
 0x451   : > { %v1375_v58 = vpop.permute.xlu2 %1374 }
 0x469   : > { %v1377_v59 = vpop.permute.xlu0 %1376 }
 0x46a   : > { %v1378_v60 = vsel %vm637_vm0, %v1375_v58, %v1377_v59  ;;  %v2477_v58 = vld [vmem:[%s4484_s1 + $0x118] sm:$0xf0] }
 0x46b   : > { %1436 = vmatmul.bf16.vlgmr.msra.gmra.mxu0 %v1378_v60  ;;  %v2480_v60 = vor.u32 %v2897_v57, %v2477_v58  ;;  %v2952_v58 = vld [vmem:[#allocation11 + $0x64] sm:$0xf] }
 0x47a   : > { %v4137_v14 = vpop.f32.mrf.mxu0 }
 0x482   : > { %v4139_v15 = vpop.f32.mrf.mxu0 }
 0x4e8   : > { %v1437_v17 = vpop.f32.mrf.mxu0 }
 0x4e9   : > { %1444 = vrot.lane.b32.xlu1 %v1437_v17, %s3536_s27  ;;  %v2955_v17 = vld [vmem:[#allocation11 + $0x74] sm:$0xf0] }
 0x4ea   : > { %v2696_v19 = vor.u32 %v2955_v17, %v2695_v9  ;;  %v2644_v9 = vor.u32 %v2940_v7, %v2641_v8  ;;  %v724_v8 = vperm.slane %v3911_v27, 3 }
 0x4ec   : > { %1602 = vmatpush.bf16.msra.mxu2 %v2696_v19  ;;  %v4239_v19 = vld [vmem:[%s4491_s8 + $0x38] sm:$0xff] }
 0x4ed   : > { %1918 = vmatpush.bf16.msrb.mxu0 %v4239_v19 }
 0x4f0   : > { %v1439_v18 = vpop.f32.mrf.mxu0 }
 0x4f1   : > { %1446 = vrot.lane.b32.xlu2 %v1439_v18, %s3536_s27  ;;  %v2953_v18 = vld [vmem:[#allocation11 + $0x6c] sm:$0xf] }
 0x4f2   : > { %v2700_v20 = vor.u32 %v2953_v18, %v2697_v1 }
 0x4f4   : > { %1616 = vmatpush.bf16.msra.mxu3 %v2700_v20 }
 0x4f8   : > { %1617 = vmatpush.bf16.msra.mxu3 %v2684_v29  ;;  %v4290_v29 = vld [vmem:[%s4491_s8 + $0x70] sm:$0xff] }
 0x4fc   : > { %1618 = vmatpush.bf16.msra.mxu3 %v2668_v43 }
 0x54b   : > { %v4173_v3 = vpop.permute.xlu2 %1446 }
 0x54c   : > { %v1452_v16 = vmax.f32 %v4103_v33, %v4173_v3  ;;  %v2871_v33 = vld [vmem:[%s4484_s1 + $0x1c] sm:$0xf] }
 0x54d   : > { %v2368_v49 = vor.u32 %v2871_v33, %v2365_v46  ;;  %v2647_v33 = vld [vmem:[#allocation11 + $0x8] sm:$0xf]  ;;  %v2640_v46 = vor.u32 %v2942_v45, %v2639_v44 }
 0x54e   : > { %1462 = vrot.lane.b32.xlu1 %v1452_v16, %s3536_s27  ;;  %v2656_v16 = vor.u32 %v2946_v39, %v2655_v30  ;;  %v2977_v30 = vld [vmem:[%s4491_s8 + $0xa8] sm:$0xff]  ;;  %v2975_v44 = vld [vmem:[%s4491_s8 + $0x98] sm:$0xff] }
 0x54f   : > { %1090 = vmatpush.bf16.msra.mxu1 %v2368_v49  ;;  %v2649_v49 = vld [vmem:[#allocation11 + $0x18] sm:$0xf0]  ;;  %v2983_v45 = vld [vmem:[%s4491_s8 + $0xd8] sm:$0xff] }
 0x550   : > { %v2652_v57 = vor.u32 %v2941_v48, %v2649_v49  ;;  %v2985_v39 = vld [vmem:[%s4491_s8 + $0xe8] sm:$0xff]  ;;  %v2982_v48 = vld [vmem:[%s4491_s8 + $0xd0] sm:$0xff]  ;;  %v2956_v49 = vld [vmem:[%s4491_s8] sm:$0xff] }
 0x552   : > { %2536 = vmatmul.msk.bf16.vlgmr.msra.gmra.mxu1 %vm637_vm0, %v3812_v26  ;;  %1619 = vmatpush.bf16.msra.mxu3 %v2652_v57 }
 0x553   : > { %1143 = vmatpush.bf16.msrb.mxu1 %v2528_v56  ;;  %v2648_v56 = vor.u32 %v2943_v47, %v2647_v33  ;;  %v2957_v33 = vld [vmem:[%s4491_s8 + $0x8] sm:$0xff]  ;;  %v2974_v47 = vld [vmem:[%s4491_s8 + $0x90] sm:$0xff] }
 0x557   : > { %1144 = vmatpush.bf16.msrb.mxu1 %v2480_v60  ;;  %v2689_v60 = vld [vmem:[#allocation11 + $0x70] sm:$0xf0] }
 0x55b   : > { %v4210_v59 = vpop.permute.xlu1 %1444  ;;  %1145 = vmatpush.bf16.msrb.mxu1 %v2432_v2  ;;  %v2676_v2 = vor.u32 %v2948_v62, %v2673_v63  ;;  %v2972_v62 = vld [vmem:[%s4491_s8 + $0x80] sm:$0xff] }
 0x55c   : > { %v1450_v61 = vmax.f32 %v4097_v31, %v4210_v59  ;;  %v2381_v31 = vld [vmem:[%s4484_s1 + $0x58] sm:$0xf0]  ;;  %v1451_v17 = vmax.f32 %v4100_v32, %v4210_v59  ;;  %v4246_v32 = vld [vmem:[%s4491_s8 + $0x30] sm:$0xff]  ;;  %v2980_v63 = vld [vmem:[%s4491_s8 + $0xc0] sm:$0xff] }
 0x55d   : > { %v2384_v6 = vor.u32 %v2873_v5, %v2381_v31  ;;  %v2944_v5 = vld [vmem:[#allocation11 + $0x24] sm:$0xf]  ;;  %v2657_v31 = vld [vmem:[#allocation11 + $0x30] sm:$0xf0]  ;;  %1919 = vmatpush.bf16.msrb.mxu0 %v4246_v32 }
 0x55e   : > { %1460 = vrot.lane.b32.xlu0 %v1450_v61, %s3536_s27  ;;  %v2692_v61 = vor.u32 %v2952_v58, %v2689_v60  ;;  %v1454_v20 = vsub.f32 0.0, %v1451_v17  ;;  %v2973_v58 = vld [vmem:[%s4491_s8 + $0x88] sm:$0xff] }
 0x55f   : > { %1146 = vmatpush.bf16.msrb.mxu1 %v2384_v6  ;;  %v2660_v6 = vor.u32 %v2944_v5, %v2657_v31  ;;  %v2981_v60 = vld [vmem:[%s4491_s8 + $0xc8] sm:$0xff] }
 0x560   : > { %v4372_v31 = vld [vmem:[%s4491_s8 + $0x48] sm:$0xff] }
 0x562   : > { %2540 = vmatmul.msk.bf16.vlgmr.msrb.gmra.mxu1 %vm637_vm0, %v3812_v26  ;;  %v2680_v26 = vor.u32 %v2951_v24, %v2679_v22  ;;  %v4261_v24 = vld [vmem:[%s4491_s8 + $0xf8] sm:$0xff] }
 0x563   : > { %1574 = vmatpush.bf16.msra.mxu1 %v2688_v10  ;;  %v1453_v10 = vmax.f32 %v4106_v34, %v4173_v3  ;;  %1960 = vmatpush.bf16.msrb.mxu3 %v4261_v24 }
 0x564   : > { %1603 = vmatpush.bf16.msra.mxu2 %v2680_v26  ;;  %v4284_v26 = vld [vmem:[%s4491_s8 + $0x78] sm:$0xff] }
 0x565   : > { %v1455_v1 = vsub.f32 0.0, %v1453_v10 }
 0x567   : > { %1575 = vmatpush.bf16.msra.mxu1 %v2672_v23  ;;  %v4256_v23 = vld [vmem:[%s4491_s8 + $0xb8] sm:$0xff]  ;;  %1961 = vmatpush.bf16.msrb.mxu3 %v2986_v25 }
 0x568   : > { %1604 = vmatpush.bf16.msra.mxu2 %v2664_v42 }
 0x56b   : > { %1576 = vmatpush.bf16.msra.mxu1 %v2656_v16  ;;  %1962 = vmatpush.bf16.msrb.mxu3 %v2985_v39  ;;  %v4312_v16 = vpop.f32.mrf.mxu1 }
 0x56c   : > { %1605 = vmatpush.bf16.msra.mxu2 %v2648_v56  ;;  %v2968_v56 = vld [vmem:[%s4491_s8 + $0x60] sm:$0xff] }
 0x56f   : > { %1577 = vmatpush.bf16.msra.mxu1 %v2640_v46  ;;  %1963 = vmatpush.bf16.msrb.mxu3 %v2984_v4  ;;  %v2969_v46 = vld [vmem:[%s4491_s8 + $0x68] sm:$0xff] }
 0x570   : > { %1946 = vmatpush.bf16.msrb.mxu2 %v4256_v23 }
 0x573   : > { %1588 = vmatpush.bf16.msrb.mxu1 %v2692_v61  ;;  %v4314_v42 = vpop.f32.mrf.mxu1  ;;  %1964 = vmatpush.bf16.msrb.mxu3 %v2983_v45  ;;  %v2967_v61 = vld [vmem:[%s4491_s8 + $0x58] sm:$0xff] }
 0x577   : > { %1589 = vmatpush.bf16.msrb.mxu1 %v2676_v2  ;;  %1965 = vmatpush.bf16.msrb.mxu3 %v2982_v48  ;;  %v2966_v2 = vld [vmem:[%s4491_s8 + $0x50] sm:$0xff] }
 0x57b   : > { %1590 = vmatpush.bf16.msrb.mxu1 %v2660_v6  ;;  %1966 = vmatpush.bf16.msrb.mxu3 %v2981_v60  ;;  %v4378_v6 = vld [vmem:[%s4491_s8 + $0x40] sm:$0xff] }
 0x57f   : > { %1591 = vmatpush.bf16.msrb.mxu1 %v2644_v9  ;;  %1967 = vmatpush.bf16.msrb.mxu3 %v2980_v63  ;;  %v728_v9 = vperm.slane %v3911_v27, 7 }
 0x5c0   : > { %v1463_v18 = vpop.permute.xlu1 %1462 }
 0x5c1   : > { %v1467_v0 = vsel %vm1457_vm1, %v1463_v18, %v1455_v1  ;;  %v4388_v18 = vld [vmem:[#allocation5 + $0x8] sm:$0xf] }
 0x5c2   : > { %v1469_v3 = vmul.f32 %v1467_v0, %v3864_v53  ;;  %v2978_v53 = vld [vmem:[%s4491_s8 + $0xb0] sm:$0xff]  ;;  %v729_v0 = vperm.slane %v4388_v18, 0 }
 0x5c3   : > { %1947 = vmatpush.bf16.msrb.mxu2 %v2978_v53 }
 0x5c7   : > { %1948 = vmatpush.bf16.msrb.mxu2 %v2977_v30 }
 0x5cb   : > { %1949 = vmatpush.bf16.msrb.mxu2 %v2976_v41 }
 0x5cf   : > { %v4316_v43 = vpop.f32.mrf.mxu1  ;;  %1950 = vmatpush.bf16.msrb.mxu2 %v2975_v44 }
 0x5d0   : > { %v1461_v21 = vpop.permute.xlu0 %1460 }
 0x5d1   : > { %v1466_v34 = vsel %vm1456_vm2, %v1461_v21, %v1454_v20  ;;  %v1093_v20 = vadd.f32 %v4316_v43, %v728_v9 }
 0x5d2   : > { %v1468_v59 = vmul.f32 %v1466_v34, %v3862_v52  ;;  %v4266_v52 = vld [vmem:[%s4491_s8 + $0x28] sm:$0xff] }
 0x5d3   : > { %1920 = vmatpush.bf16.msrb.mxu0 %v4266_v52  ;;  %1951 = vmatpush.bf16.msrb.mxu2 %v2974_v47 }
 0x5d4   : > { %v1470_v22 = vpack.c.bf16 %v1469_v3, %v1468_v59  ;;  %v1107_v3 = vadd.f32 %v3919_v37, %v729_v0 }
 0x5d6   : > { %2701 = vmatmul.msk.bf16.vlgmr.msra.gmra.mxu1 %vm637_vm0, %v1470_v22  ;;  %2703 = vmatmul.msk.bf16.vlgmr.msra.gmra.mxu2 %vm637_vm0, %v1470_v22 }
 0x5d7   : > { %2704 = vmatmul.msk.bf16.vlgmr.msra.gmra.mxu3 %vm637_vm0, %v1470_v22  ;;  %1932 = vmatpush.bf16.msra.mxu1 %v4284_v26  ;;  %v4342_v57 = vpop.f32.mrf.mxu1 }
 0x5d8   : > { %1921 = vmatpush.bf16.msrb.mxu0 %v2960_v28  ;;  %1952 = vmatpush.bf16.msrb.mxu2 %v2973_v58 }
 0x5d9   : > { %2028 = vmatpush.bf16.msra.mxu3 %v4261_v24  ;;  %v1095_v24 = vadd.f32 %v4342_v57, %v728_v9 }
 0x5db   : > { %1933 = vmatpush.bf16.msra.mxu1 %v4290_v29 }
 0x5dc   : > { %1922 = vmatpush.bf16.msrb.mxu0 %v2959_v40  ;;  %1953 = vmatpush.bf16.msrb.mxu2 %v2972_v62 }
 0x5dd   : > { %2029 = vmatpush.bf16.msra.mxu3 %v2986_v25 }
 0x5df   : > { %1934 = vmatpush.bf16.msra.mxu1 %v2969_v46  ;;  %v4364_v5 = vpop.f32.mrf.mxu1 }
 0x5e0   : > { %1923 = vmatpush.bf16.msrb.mxu0 %v2958_v13  ;;  %2014 = vmatpush.bf16.msra.mxu2 %v4256_v23  ;;  %v1039_v23 = vadd.f32 %v4314_v42, %v724_v8  ;;  %v1109_v42 = vadd.f32 %v3921_v38, %v729_v0 }
 0x5e1   : > { %2030 = vmatpush.bf16.msra.mxu3 %v2985_v39 }
 0x5e3   : > { %1935 = vmatpush.bf16.msra.mxu1 %v2968_v56 }
 0x5e4   : > { %1924 = vmatpush.bf16.msrb.mxu0 %v2957_v33  ;;  %2015 = vmatpush.bf16.msra.mxu2 %v2978_v53 }
 0x5e5   : > { %2031 = vmatpush.bf16.msra.mxu3 %v2984_v4 }
 0x5e6   : > { %2702 = vmatmul.msk.bf16.vlgmr.msrb.gmra.mxu1 %vm637_vm0, %v1470_v22 }
 0x5e7   : > { %1936 = vmatpush.bf16.msra.mxu1 %v2967_v61  ;;  %v4381_v7 = vpop.f32.mrf.mxu1 }
 0x5e8   : > { %1925 = vmatpush.bf16.msrb.mxu0 %v2956_v49  ;;  %2016 = vmatpush.bf16.msra.mxu2 %v2977_v30 }
 0x5e9   : > { %2032 = vmatpush.bf16.msra.mxu3 %v2983_v45 }
 0x5eb   : > { %1937 = vmatpush.bf16.msra.mxu1 %v2966_v2 }
 0x5ec   : > { %1986 = vmatpush.bf16.msra.mxu0 %v4239_v19  ;;  %2017 = vmatpush.bf16.msra.mxu2 %v2976_v41  ;;  %v1037_v19 = vadd.f32 %v4312_v16, %v724_v8  ;;  %v732_v8 = vperm.slane %v4388_v18, 3 }
 0x5ed   : > { %2033 = vmatpush.bf16.msra.mxu3 %v2982_v48 }
 0x5ef   : > { %1938 = vmatpush.bf16.msra.mxu1 %v4372_v31 }
 0x5f0   : > { %1987 = vmatpush.bf16.msra.mxu0 %v4246_v32  ;;  %2018 = vmatpush.bf16.msra.mxu2 %v2975_v44  ;;  %v1629_v32 = vmul.f32 %v1093_v20, %v1037_v19 }
 0x5f1   : > { %2034 = vmatpush.bf16.msra.mxu3 %v2981_v60 }
 0x5f3   : > { %1939 = vmatpush.bf16.msra.mxu1 %v4378_v6 }
 0x5f4   : > { %1988 = vmatpush.bf16.msra.mxu0 %v4266_v52  ;;  %2019 = vmatpush.bf16.msra.mxu2 %v2974_v47 }
 0x5f5   : > { %2035 = vmatpush.bf16.msra.mxu3 %v2980_v63 }
 0x5f7   : > { %2000 = vmatpush.bf16.msrb.mxu1 %v4284_v26 }
 0x5f8   : > { %1989 = vmatpush.bf16.msra.mxu0 %v2960_v28  ;;  %2020 = vmatpush.bf16.msra.mxu2 %v2973_v58 }
 0x5fb   : > { %2001 = vmatpush.bf16.msrb.mxu1 %v4290_v29  ;;  %v1633_v29 = vmul.f32 %v1095_v24, %v1039_v23 }
 0x5fc   : > { %1990 = vmatpush.bf16.msra.mxu0 %v2959_v40  ;;  %2021 = vmatpush.bf16.msra.mxu2 %v2972_v62 }
 0x5ff   : > { %2002 = vmatpush.bf16.msrb.mxu1 %v2969_v46 }
 0x600   : > { %1991 = vmatpush.bf16.msra.mxu0 %v2958_v13 }
 0x603   : > { %2003 = vmatpush.bf16.msrb.mxu1 %v2968_v56 }
 0x604   : > { %1992 = vmatpush.bf16.msra.mxu0 %v2957_v33 }
 0x607   : > { %2004 = vmatpush.bf16.msrb.mxu1 %v2967_v61 }
 0x608   : > { %1993 = vmatpush.bf16.msra.mxu0 %v2956_v49 }
 0x60b   : > { %2005 = vmatpush.bf16.msrb.mxu1 %v2966_v2 }
 0x60f   : > { %2006 = vmatpush.bf16.msrb.mxu1 %v4372_v31 }
 0x613   : > { %2007 = vmatpush.bf16.msrb.mxu1 %v4378_v6 }
 0x653   : > { %v1579_v10 = vpop.f32.mrf.mxu1 }
 0x654   : > { %v1634_v17 = vsub.f32 %v3915_v35, %v1579_v10 }
 0x656   : > { %v1642_v1 = vmul.f32 1.442695, %v1634_v17  ;;  %v1151_v17 = vadd.f32 %v4381_v7, %v732_v8 }
 0x658   : > { %3125 = vpow2.f32 %v1642_v1  ;;  %v1149_v1 = vadd.f32 %v4364_v5, %v732_v8 }
 0x659   : > { %v1607_v27 = vpop.f32.mrf.mxu2 }
 0x65a   : > { %v1636_v21 = vsub.f32 %v4133_v11, %v1607_v27  ;;  %v1621_v35 = vpop.f32.mrf.mxu3  ;;  %v731_v11 = vperm.slane %v4388_v18, 2  ;;  %v2991_v27 = vld [vmem:[#allocation10 + $0x18] sm:$0xff] }
 0x65b   : > { %v1581_v34 = vpop.f32.mrf.mxu1  ;;  %v1637_v52 = vsub.f32 %v1629_v32, %v1621_v35  ;;  %v2988_v32 = vld [vmem:[#allocation10] sm:$0xff] }
 0x65c   : > { %v1646_v59 = vmul.f32 1.442695, %v1636_v21  ;;  %v1638_v22 = vsub.f32 %v3917_v36, %v1581_v34  ;;  %v1135_v39 = vadd.f32 %v4137_v14, %v731_v11  ;;  %v730_v14 = vperm.slane %v4388_v18, 1  ;;  %v2990_v18 = vld [vmem:[#allocation10 + $0x10] sm:$0xff]  ;;  %v2989_v21 = vld [vmem:[#allocation10 + $0x8] sm:$0xff] }
 0x65d   : > { %v1648_v26 = vmul.f32 1.442695, %v1637_v52 }
 0x65e   : > { %v3126_v53 = vpop.eup %3125  ;;  %3127 = vpow2.f32 %v1646_v59  ;;  %v1650_v25 = vmul.f32 1.442695, %v1638_v22  ;;  %v1121_v58 = vadd.f32 %v4028_v54, %v730_v14 }
 0x65f   : > { %v1974_v28 = vmul.f32 %v3126_v53, %v1107_v3 }
 0x660   : > { %3129 = vpow2.f32 %v1650_v25 }
 0x661   : > { %v1609_v37 = vpop.f32.mrf.mxu2  ;;  %3131 = vpow2.f32 %v1648_v26 }
 0x662   : > { %v1640_v36 = vsub.f32 %v4135_v12, %v1609_v37  ;;  %v1623_v30 = vpop.f32.mrf.mxu3 }
 0x663   : > { %v1641_v40 = vsub.f32 %v1633_v29, %v1623_v30  ;;  %v1593_v41 = vpop.f32.mrf.mxu1 }
 0x664   : > { %v3128_v4 = vpop.eup %3127  ;;  %v1654_v13 = vmul.f32 1.442695, %v1640_v36  ;;  %v1635_v16 = vsub.f32 %v4024_v50, %v1593_v41  ;;  %v1137_v50 = vadd.f32 %v4139_v15, %v731_v11  ;;  %v1123_v15 = vadd.f32 %v4030_v55, %v730_v14  ;;  %v3124_v14 = vld [vmem:[%s4489_s6] ss:$0 sm:$0xff] }
 0x665   : > { %v1976_v43 = vmul.f32 %v3128_v4, %v1135_v39  ;;  %v1656_v44 = vmul.f32 1.442695, %v1641_v40 }
 0x666   : > { %v3130_v45 = vpop.eup %3129  ;;  %3133 = vpow2.f32 %v1654_v13  ;;  %v1644_v33 = vmul.f32 1.442695, %v1635_v16 }
 0x667   : > { %v1978_v12 = vmul.f32 %v3130_v45, %v1109_v42  ;;  %3135 = vpow2.f32 %v1656_v44  ;;  %v1722_v46 = vpack.c.bf16 %v3130_v45, %v3126_v53  ;;  %v3132_v48 = vpop.eup %3131 }
 0x668   : > { %3137 = vpow2.f32 %v1644_v33  ;;  %v1977_v20 = vmul.f32 %v3132_v48, %v1149_v1 }
 0x669   : > { %1926 = vmatmul.bf16.vlgmr.msrb.gmra.mxu0 %v1722_v46  ;;  %v1982_v47 = vpack.c.bf16 %v1978_v12, %v1974_v28 }
 0x66a   : > { %2090 = vmatpush.bf16.msrb.mxu0 %v2991_v27 }
 0x66b   : > { %v1595_v38 = vpop.f32.mrf.mxu1 }
 0x66c   : > { %v3134_v49 = vpop.eup %3133  ;;  %v1639_v56 = vsub.f32 %v4026_v51, %v1595_v38 }
 0x66d   : > { %v3136_v57 = vpop.eup %3135  ;;  %v1980_v60 = vmul.f32 %v3134_v49, %v1137_v50  ;;  %v1724_v61 = vpack.c.bf16 %v3134_v49, %v3128_v4 }
 0x66e   : > { %v3138_v62 = vpop.eup %3137  ;;  %v1652_v63 = vmul.f32 1.442695, %v1639_v56  ;;  %v1725_v2 = vpack.c.bf16 %v3136_v57, %v3132_v48  ;;  %v1981_v19 = vmul.f32 %v3136_v57, %v1151_v17  ;;  %2091 = vmatpush.bf16.msrb.mxu0 %v2990_v18 }
 0x66f   : > { %v1975_v31 = vmul.f32 %v3138_v62, %v1121_v58  ;;  %1954 = vmatmul.bf16.vlgmr.msrb.gmra.mxu2 %v1724_v61  ;;  %v1984_v6 = vpack.c.bf16 %v1980_v60, %v1976_v43 }
 0x670   : > { %3139 = vpow2.f32 %v1652_v63  ;;  %1968 = vmatmul.bf16.vlgmr.msrb.gmra.mxu3 %v1725_v2  ;;  %v1985_v0 = vpack.c.bf16 %v1981_v19, %v1977_v20 }
 0x672   : > { %2092 = vmatpush.bf16.msrb.mxu0 %v2989_v21 }
 0x676   : > { %v3140_v9 = vpop.eup %3139  ;;  %2093 = vmatpush.bf16.msrb.mxu0 %v2988_v32 }
 0x677   : > { %v1979_v10 = vmul.f32 %v3140_v9, %v1123_v15  ;;  %v1723_v51 = vpack.c.bf16 %v3140_v9, %v3138_v62 }
 0x679   : > { %1940 = vmatmul.bf16.vlgmr.msra.gmra.mxu1 %v1723_v51  ;;  %1994 = vmatmul.bf16.vlgmr.msra.gmra.mxu0 %v1982_v47  ;;  %v1983_v54 = vpack.c.bf16 %v1979_v10, %v1975_v31 }
 0x67f   : > { %2022 = vmatmul.bf16.vlgmr.msra.gmra.mxu2 %v1984_v6 }
 0x680   : > { %2036 = vmatmul.bf16.vlgmr.msra.gmra.mxu3 %v1985_v0 }
 0x689   : > { %2008 = vmatmul.bf16.vlgmr.msrb.gmra.mxu1 %v1983_v54 }
 0x6e6   : > { %v1927_v55 = vpop.f32.mrf.mxu0 }
 0x6ee   : > { %v1929_v3 = vpop.f32.mrf.mxu0 }
 0x6f2   : > { %v1955_v35 = vpop.f32.mrf.mxu2 }
 0x6f3   : > { %v1969_v7 = vpop.f32.mrf.mxu3 }
 0x6f6   : > { %v1941_v34 = vpop.f32.mrf.mxu1  ;;  %v1995_v52 = vpop.f32.mrf.mxu0 }
 0x6f7   : > { %v1942_v23 = vadd.f32 %v1941_v34, %v1927_v55 }
 0x6f9   : > { %v1956_v53 = vadd.f32 %v1955_v35, %v1942_v23 }
 0x6fa   : > { %v1957_v5 = vpop.f32.mrf.mxu2 }
 0x6fb   : > { %v1971_v59 = vpop.f32.mrf.mxu3  ;;  %v1970_v37 = vadd.f32 %v1969_v7, %v1956_v53 }
 0x6fd   : > { %3141 = vrcp.f32 %v1970_v37 }
 0x6fe   : > { %v1943_v22 = vpop.f32.mrf.mxu1  ;;  %v1997_v39 = vpop.f32.mrf.mxu0 }
 0x6ff   : > { %v1944_v24 = vadd.f32 %v1943_v22, %v1929_v3 }
 0x701   : > { %v1958_v25 = vadd.f32 %v1957_v5, %v1944_v24 }
 0x702   : > { %v2023_v11 = vpop.f32.mrf.mxu2 }
 0x703   : > { %v2037_v26 = vpop.f32.mrf.mxu3  ;;  %v1972_v36 = vadd.f32 %v1971_v59, %v1958_v25  ;;  %v3142_v43 = vpop.eup %3141 }
 0x705   : > { %3143 = vrcp.f32 %v1972_v36 }
 0x706   : > { %v2009_v28 = vpop.f32.mrf.mxu1 }
 0x707   : > { %v2010_v29 = vadd.f32 %v2009_v28, %v1995_v52 }
 0x709   : > { %v2024_v30 = vadd.f32 %v2023_v11, %v2010_v29 }
 0x70a   : > { %v2025_v4 = vpop.f32.mrf.mxu2 }
 0x70b   : > { %v2038_v13 = vadd.f32 %v2037_v26, %v2024_v30  ;;  %v2039_v42 = vpop.f32.mrf.mxu3  ;;  %v3144_v45 = vpop.eup %3143 }
 0x70d   : > { %v2044_v33 = vmul.f32 %v3142_v43, %v2038_v13 }
 0x70e   : > { %v2011_v40 = vpop.f32.mrf.mxu1 }
 0x70f   : > { %v2012_v41 = vadd.f32 %v2011_v40, %v1997_v39 }
 0x711   : > { %v2026_v16 = vadd.f32 %v2025_v4, %v2012_v41 }
 0x713   : > { %v2040_v44 = vadd.f32 %v2039_v42, %v2026_v16 }
 0x715   : > { %v2045_v12 = vmul.f32 %v3144_v45, %v2040_v44 }
 0x717   : > { %v2046_v46 = vpack.c.bf16 %v2045_v12, %v2044_v33 }
 0x719   : > { %2849 = vmatmul.msk.bf16.vlgmr.msrb.gmra.mxu0 %vm637_vm0, %v2046_v46 }
 0x796   : > { %v2095_v47 = vpop.f32.mrf.mxu0 }
 0x797   : > { %v2096_v48 = vadd.f32 %v3124_v14, %v2095_v47 }
 0x799   : > { %2100 = vst.msk [vmem:[%s568_s18] sm:$0xff] %vm637_vm0, %v2096_v48 }
 0x79d   : > { %2109 = sbr.rel (!%p3657_p11) target bundleno = 1985 (0x7c1), region = 108 }
 0x79e   : > { %v2097_v50 = vpop.f32.mrf.mxu0 }
 0x79f   : > { %v2098_v38 = vadd.f32 %v3124_v14, %v2097_v50 }
 0x7a1   : > { %2101 = vst.msk [vmem:[%s568_s18 + $0x8] sm:$0xff] %vm637_vm0, %v2098_v38 }
 0x7a2   : > { %s4548_s2 = smov (!%p2112_p1, %s2111_s2), 2 }
 0x7a3   : > { %s2852_s14 = sshll.u32 %s4548_s2, 3 }
 0x7a4   : > { %s2115_s7 = ssub.s32 16, %s2852_s14 }
 0x7a5   : > { %s2116_s17 = sshll.u32 %s2115_s7, 4 }
 0x7a6   : > { %2117 = vsyncadd %s2103_s26, %s2116_s17  ;;  %p4430_p0 = scmp.ne.s32.totalorder %s2852_s14, 0  ;;  %s2992_s13 = sshll.u32 %s3626_s25, 4 }
 0x7a7   : > { %s4535_s30 = sld [smem:[#allocation33_spill]]  ;;  %s2122_s4 = sshll.u32 %s568_s18, 4  ;;  %s4438_s4 = int_to_ptr.vmem [resolvable:$true] %s2122_s4 }
 0x7a8   : > { %s2856_s21 = sshll.u32 %s4548_s2, 7  ;;  %s3424_s16 = sshra.s32 %s4438_s4, 4  ;;  %s3425_s16 = int_to_ptr.vmem [resolvable:$true] %s3424_s16 }
 0x7a9   : > { %s3426_s27 = sshrl.u32 %s2856_s21, 4  ;;  %s3537_s25 = smov [#allocation17]  }
 0x7aa   : > { %s3431_s29 = scalar_lea.vmem %s3425_s16, %s3426_s27  ;;  %s3435_s14 = scalar_lea.vmem %s3537_s25, 32 }
 0x7ab   : > { %p3432_p11 = scmp.ne.s32.totalorder %s3425_s16, %s3431_s29  ;;  %p3437_p8 = scmp.lt.s32.totalorder %s3435_s14, %s3431_s29 }
 0x7ad   : > { %s2120_s19 = scalar_lea.hbm %s4535_s30, %s2992_s13  ;;  %p3433_p3 = pnand %p3432_p11, %p4430_p0 }
 0x7ae   : > { %s2124_s12 = sshll.u32 %s2120_s19, 4  ;;  %s4440_s12 = int_to_ptr.hbm [resolvable:$true] %s2124_s12 }
 0x7af   : > { %p3434_p7 = pneg %p3433_p3 }
 0x7b1   : > { %p3439_p4 = pnand %p3437_p8, %p3434_p7 }
 0x7b3   : > { %3442 = shalt.err (!%p3439_p4)
}
 0x7b4   : > { %s3443_s18 = sshra.s32 %s4440_s12, 4  ;;  %s3454_s15 = scalar_lea.hbm %s4535_s30, 24  ;;  %s3444_s18 = int_to_ptr.hbm [resolvable:$true] %s3443_s18 }
 0x7b5   : > { %s3450_s7 = scalar_lea.hbm %s3444_s18, %s3426_s27  ;;  %p3455_p5 = scmp.lt.s32.totalorder %s3444_s18, %s4535_s30 }
 0x7b6   : > { %p3451_p12 = scmp.ne.s32.totalorder %s3444_s18, %s3450_s7  ;;  %p3456_p9 = scmp.lt.s32.totalorder %s3454_s15, %s3450_s7 }
 0x7b8   : > { %p3452_p13 = pnand %p3451_p12, %p4430_p0  ;;  %p3457_p6 = por %p3456_p9, %p3455_p5 }
 0x7ba   : > { %p3453_p2 = pneg %p3452_p13 }
 0x7bc   : > { %p3458_p10 = pnand %p3457_p6, %p3453_p2 }
 0x7be   : > { %3461 = shalt.err (!%p3458_p10)
}
 0x7bf   : > { %s3538_s16 = smov 128   ;;  %s3539_s27 = smov 8  }
 0x7c0   : > { %2130 = dma.vmem_to_hbm [thread:$0]  (%p4430_p0), %s4438_s4, %s2856_s21, %s4440_s12, %s2103_s26, %s3538_s16, %s3538_s16, %s3539_s27  }
 0x7c1 PF: > { %s4536_s29 = sld [smem:[#allocation24_spill]]  ;;  %p4539_p11 = scmp.ge.s32.totalorder %s3517_s24, 2 }
 0x7c2   : > { %s4537_s25 = sld [smem:[#allocation28_spill]] }
 0x7c7   : > { %s2139_s14 = sand.u32 1, %s4536_s29  }
 0x7c8   : > { %p4538_p1 = scmp.ne.s32.totalorder %s4537_s25, 0  ;;  %s2140_s18 = scalar_lea.sflag [#allocation4], %s2139_s14 }
 0x7ca   : > { %p3053_p3 = pnand %p4539_p11, %p4538_p1 }
 0x7cc   : > { %p3054_p7 = pneg %p3053_p3 }
 0x7ce   : > { %3500 = dma.done.wait (%p3054_p7), %s2140_s18, 256  }
 0x7cf   : > { %3502 = vsyncadd (%p3054_p7), %s2140_s18, 4294967040  ;;  %s4540_s24 = sld [smem:[#allocation25_spill]]  ;;  %s4542_s21 = smov %s3509_s22 }
 0x7d0   : > { %s4541_s20 = sld [smem:[#allocation26_spill]]  ;;  %s4543_s22 = smov %s3513_s23 }
 0x7d5   : > { %p29_p8 = scmp.ge.s32.totalorder %s4540_s24, 4  }
 0x7d6   : > { %s4544_s23 = smov %s4541_s20 }
 0x7d7   :  { %31 = sbr.rel (!%p29_p8) target bundleno = 15 (0xf), region = 145 }
 0x7dc   :  { %2146 = vsyncpa [#allocation3], 1 }
 0x7dd   :  { %2148 = vsyncpa [#allocation3 + $0x1], 1 }
 0x7de   :  { %2149 = vsyncpa [#allocation6], 1 }
 0x7df   :  { %2150 = vsyncpa [#allocation9], 1 }
 0x7e0   :  { %2151 = vsyncpa [#allocation12], 1 }
 0x7e1   :  { %2152 = vsyncpa [#allocation15], 1 }
 0x7e2   :  { %2153 = vsyncpa [#allocation4], 1 }
 0x7e3   :  { %2155 = vsyncpa [#allocation4 + $0x1], 1 }

</bundles_post_ra>
